<compile_context>
chip_gen: v5e
topology: v5e:2x2
jax: 0.10.0
libtpu: 0.0.40
codegen_flags: <defaults>
</compile_context>

<pallas_src>
import functools

import jax
import jax.numpy as jnp
from jax.experimental import pallas as pl
from jax.experimental.pallas import tpu as pltpu

_LANE = 128
_SUBLANE = 8
_DST_COL = _LANE - 1  # fixed lane holding the folded <h, a_dst> score


# --------------------------------------------------------------------------- #
# Fused Pallas kernel: conv1 -> ReLU -> conv2 -> ReLU -> conv3 -> mean-pool
# --------------------------------------------------------------------------- #
def _pose_gat_fused_kernel(x_ref, adj_ref, pool_ref,
                           w1_ref, as1_ref, b1_ref,
                           w2_ref, as2_ref, b2_ref,
                           w3_ref, as3_ref, b3_ref,
                           o_ref, *, negative_slope, dst_col):
    neg_fill = jnp.float32(-1e30)

    def gat_layer(feat, w_ref, as_ref, b_ref, apply_relu):
        # h = feat @ W_aug on the MXU (bf16 in, f32 accumulate).  Column
        # `dst_col` of W_aug holds W @ a_dst^T, so h[:, dst_col] == <h, a_dst>.
        feat_b = feat.astype(jnp.bfloat16)
        h = jnp.dot(feat_b, w_ref[...], preferred_element_type=jnp.float32)   # (N, C) f32
        h_b = h.astype(jnp.bfloat16)

        # Attention logits  e[i, j] = <h[i], a_dst> + <h[j], a_src>
        #   dst term: already a column of h (folded into W in the wrapper).
        #   src term: (1,C)x(N,C) bf16 matvec on the MXU -> (1, N), no transpose.
        e_dst = h[:, dst_col:dst_col + 1]                                      # (N, 1)
        e_src = jax.lax.dot_general(as_ref[...], h_b, (((1,), (1,)), ((), ())),
                                    preferred_element_type=jnp.float32)        # (1, N)
        e = e_dst + e_src                                                      # (N, N)
        e = jnp.where(e >= 0, e, negative_slope * e)                           # LeakyReLU

        # Mask rematerialized per layer from the VMEM-resident int8 adjacency
        # (one vld + convert + cmp; keeps fewer (N,N) temporaries live).
        mask = adj_ref[...].astype(jnp.float32) > 0.0
        e = jnp.where(mask, e, neg_fill)

        # Masked softmax over source nodes.  Every row has a self-loop, so the
        # masked -1e30 entries underflow to exactly 0 in exp — no second select.
        e_max = jnp.max(e, axis=-1, keepdims=True)
        p = jnp.exp(e - e_max)
        denom = jnp.sum(p, axis=-1, keepdims=True)
        inv = pl.reciprocal(jnp.maximum(denom, 1e-30), approx=True)            # EUP slot
        alpha_b = (p * inv).astype(jnp.bfloat16)

        out = jnp.dot(alpha_b, h_b, preferred_element_type=jnp.float32)        # (N, C) MXU
        out = out + b_ref[...]
        return jnp.maximum(out, 0.0) if apply_relu else out

    h1 = gat_layer(x_ref[...], w1_ref, as1_ref, b1_ref, True)
    h2 = gat_layer(h1, w2_ref, as2_ref, b2_ref, True)
    h3 = gat_layer(h2, w3_ref, as3_ref, b3_ref, False)

    # global_mean_pool == pool_mat @ h  (row-normalized one-hot of `batch`)
    o_ref[...] = jnp.dot(pool_ref[...], h3.astype(jnp.bfloat16),
                         preferred_element_type=jnp.float32)


# --------------------------------------------------------------------------- #
# Wrapper: pad to lane/MXU-friendly shapes and launch one fused pallas_call
# --------------------------------------------------------------------------- #
def _ceil_to(x, m):
    return ((x + m - 1) // m) * m


def _pad2d(a, rows, cols):
    return jnp.pad(a, ((0, rows - a.shape[0]), (0, cols - a.shape[1])))


def _full_spec(shape):
    return pl.BlockSpec(shape, lambda i: (0,) * len(shape))


def pose_gat_forward(x, adj, pool_mat, params):
    N, F = x.shape
    G = pool_mat.shape[0]
    c1 = params["conv1"][0].shape[1]
    c2 = params["conv2"][0].shape[1]
    c3 = params["conv3"][0].shape[1]

    # Lane-dense padding: node axis -> multiple of 128, feature axes -> 128,
    # graph axis -> multiple of 8 (sublane).  Padded nodes get a self-loop and a
    # zero column in pool_mat, so they cannot influence real outputs; padded
    # channels stay zero because the padded weights/att/bias are zero.
    Np = _ceil_to(N, _LANE)
    Gp = _ceil_to(G, _SUBLANE)
    Fp = _ceil_to(F, _LANE)
    C1p, C2p, C3p = (_ceil_to(c, _LANE) for c in (c1, c2, c3))
    assert max(c1, c2, c3) < _DST_COL, "need a free lane for the folded a_dst column"

    x_p = _pad2d(x, Np, Fp).astype(jnp.bfloat16)
    adj_p = jnp.maximum(_pad2d(adj, Np, Np), jnp.eye(Np, dtype=adj.dtype))
    adj_i8 = (adj_p > 0).astype(jnp.int8)                       # 4x less DMA/VMEM
    pool_p = _pad2d(pool_mat, Gp, Np).astype(jnp.bfloat16)      # 1/16 is exact in bf16

    def pad_layer(p, f_in_p, f_out_p):
        w, a_src, a_dst, bias = p
        f_in = w.shape[0]
        w_aug = _pad2d(w, f_in_p, f_out_p)
        # Fold a_dst into W:  (x @ W_aug)[:, _DST_COL] == <x @ W, a_dst>.
        w_aug = w_aug.at[:f_in, _DST_COL].set((w @ a_dst.T)[:, 0])
        return (w_aug.astype(jnp.bfloat16),
                _pad2d(a_src, 1, f_out_p).astype(jnp.bfloat16),
                _pad2d(bias, 1, f_out_p))                        # bias stays f32

    w1, as1, b1 = pad_layer(params["conv1"], Fp, C1p)
    w2, as2, b2 = pad_layer(params["conv2"], C1p, C2p)
    w3, as3, b3 = pad_layer(params["conv3"], C2p, C3p)

    operands = (x_p, adj_i8, pool_p,
                w1, as1, b1,
                w2, as2, b2,
                w3, as3, b3)

    # Advisory cost hint for XLA's scheduler around the fused call.
    flops = 0
    for fin, fout in ((Fp, C1p), (C1p, C2p), (C2p, C3p)):
        flops += 2 * Np * fin * fout        # feat @ W_aug
        flops += 2 * Np * fout              # a_src matvec
        flops += 2 * Np * Np * fout         # alpha @ h
    flops += 2 * Gp * Np * C3p              # mean-pool matmul
    bytes_accessed = sum(int(o.size) * o.dtype.itemsize for o in operands)
    bytes_accessed += Gp * C3p * 4
    transcendentals = 3 * Np * Np           # one exp per (N,N) logit per layer

    kernel = functools.partial(_pose_gat_fused_kernel,
                               negative_slope=0.2, dst_col=_DST_COL)
    out_p = pl.pallas_call(
        kernel,
        out_shape=jax.ShapeDtypeStruct((Gp, C3p), jnp.float32),
        grid=(1,),
        in_specs=[_full_spec(o.shape) for o in operands],
        out_specs=_full_spec((Gp, C3p)),
        compiler_params=pltpu.CompilerParams(
            dimension_semantics=("arbitrary",)),
        cost_estimate=pl.CostEstimate(flops=int(flops),
                                      transcendentals=int(transcendentals),
                                      bytes_accessed=int(bytes_accessed)),
    )(*operands)

    return out_p[:G, :c3]


# --------------------------------------------------------------------------- #
# Pure-JAX reference (for correctness check; full f32)
# --------------------------------------------------------------------------- #
def _gat_layer_ref(x, w, a_src, a_dst, bias, adj, apply_relu):
    h = x @ w
    asr = (h * a_src).sum(-1)
    ads = (h * a_dst).sum(-1)
    e = ads[:, None] + asr[None, :]
    e = jnp.where(e >= 0, e, 0.2 * e)
    e = jnp.where(adj > 0, e, -1e30)
    alpha = jax.nn.softmax(e, axis=-1) * (adj > 0)
    out = alpha @ h + bias
    return jnp.maximum(out, 0.0) if apply_relu else out


def pose_gat_ref(x, adj, pool_mat, params):
    h = _gat_layer_ref(x, *params["conv1"], adj, True)
    h = _gat_layer_ref(h, *params["conv2"], adj, True)
    h = _gat_layer_ref(h, *params["conv3"], adj, False)
    return pool_mat @ h


# --------------------------------------------------------------------------- #
# Deterministic parameter / graph construction
# --------------------------------------------------------------------------- #
def _init_gat_params(key, f_in, f_out):
    k1, k2, k3 = jax.random.split(key, 3)
    scale = jnp.sqrt(6.0 / (f_in + f_out))
    w = jax.random.uniform(k1, (f_in, f_out), jnp.float32, -scale, scale)
    a_src = jax.random.uniform(k2, (1, f_out), jnp.float32, -scale, scale)
    a_dst = jax.random.uniform(k3, (1, f_out), jnp.float32, -scale, scale)
    bias = jnp.zeros((1, f_out), jnp.float32)
    return (w, a_src, a_dst, bias)


def _build_graph(nodes_per_graph, num_graphs):
    N = nodes_per_graph * num_graphs
    # skeleton-like template: a chain plus a few cross edges (undirected)
    src_t = jnp.array([0, 1, 2, 3, 4, 5, 6, 7, 8, 9, 10, 11, 12, 13, 14, 0, 2, 4],
                      dtype=jnp.int32)
    dst_t = jnp.array([1, 2, 3, 4, 5, 6, 7, 8, 9, 10, 11, 12, 13, 14, 15, 5, 7, 9],
                      dtype=jnp.int32)
    adj = jnp.zeros((N, N), jnp.float32)
    for g in range(num_graphs):
        off = g * nodes_per_graph
        adj = adj.at[dst_t + off, src_t + off].set(1.0)
        adj = adj.at[src_t + off, dst_t + off].set(1.0)
    adj = jnp.maximum(adj, jnp.eye(N, dtype=jnp.float32))   # self-loops (PyG default)
    batch = jnp.repeat(jnp.arange(num_graphs), nodes_per_graph)
    pool_mat = (jax.nn.one_hot(batch, num_graphs, dtype=jnp.float32).T
                / float(nodes_per_graph))                    # (G, N)
    return adj, pool_mat


# --------------------------------------------------------------------------- #
if __name__ == "__main__":
    num_features, hidden_dim1, hidden_dim2, output_dim = 4, 32, 32, 8
    # Pack 8 graphs of 16 nodes -> N = 128 so the node axis is lane-dense.
    nodes_per_graph, num_graphs = 16, 8
    N = nodes_per_graph * num_graphs

    key = jax.random.PRNGKey(0)
    kx, k1, k2, k3 = jax.random.split(key, 4)

    x = jax.random.normal(kx, (N, num_features), jnp.float32)
    adj, pool_mat = _build_graph(nodes_per_graph, num_graphs)

    params = {
        "conv1": _init_gat_params(k1, num_features, hidden_dim1),
        "conv2": _init_gat_params(k2, hidden_dim1, hidden_dim2),
        "conv3": _init_gat_params(k3, hidden_dim2, output_dim),
    }

    out = jax.block_until_ready(pose_gat_forward(x, adj, pool_mat, params))
    ref = jax.block_until_ready(pose_gat_ref(x, adj, pool_mat, params))

    assert out.shape == (num_graphs, output_dim)
    # Tolerance reflects bf16 MXU inputs (8-bit mantissa) stacked across 3 GAT
    # layers + the EUP approximate reciprocal; row stats / accumulation are f32.
    assert jnp.allclose(out, ref, atol=3e-2, rtol=3e-2), "mismatch vs reference"
    print("KERNEL_OK")
</pallas_src>

<mosaic_0001>
module attributes {stable_mosaic.version = 11 : i64} {
  func.func @_pose_gat_fused_kernel(%arg0: i32, %arg1: memref<128x128xbf16, #tpu.memory_space<vmem>>, %arg2: memref<128x128xi8, #tpu.memory_space<vmem>>, %arg3: memref<8x128xbf16, #tpu.memory_space<vmem>>, %arg4: memref<128x128xbf16, #tpu.memory_space<vmem>>, %arg5: memref<1x128xbf16, #tpu.memory_space<vmem>>, %arg6: memref<1x128xf32, #tpu.memory_space<vmem>>, %arg7: memref<128x128xbf16, #tpu.memory_space<vmem>>, %arg8: memref<1x128xbf16, #tpu.memory_space<vmem>>, %arg9: memref<1x128xf32, #tpu.memory_space<vmem>>, %arg10: memref<128x128xbf16, #tpu.memory_space<vmem>>, %arg11: memref<1x128xbf16, #tpu.memory_space<vmem>>, %arg12: memref<1x128xf32, #tpu.memory_space<vmem>>, %arg13: memref<8x128xf32, #tpu.memory_space<vmem>>) attributes {dimension_semantics = [#tpu.dimension_semantics<arbitrary>], iteration_bounds = array<i64: 1>, scalar_prefetch = 0 : i64, scratch_operands = 0 : i64, tpu.core_type = #tpu.core_type<tc>, window_params = [{pipeline_mode = #tpu.pipeline_mode<synchronous>, transform_indices = @transform_0, window_bounds = array<i64: 128, 128>}, {pipeline_mode = #tpu.pipeline_mode<synchronous>, transform_indices = @transform_1, window_bounds = array<i64: 128, 128>}, {pipeline_mode = #tpu.pipeline_mode<synchronous>, transform_indices = @transform_2, window_bounds = array<i64: 8, 128>}, {pipeline_mode = #tpu.pipeline_mode<synchronous>, transform_indices = @transform_3, window_bounds = array<i64: 128, 128>}, {pipeline_mode = #tpu.pipeline_mode<synchronous>, transform_indices = @transform_4, window_bounds = array<i64: 1, 128>}, {pipeline_mode = #tpu.pipeline_mode<synchronous>, transform_indices = @transform_5, window_bounds = array<i64: 1, 128>}, {pipeline_mode = #tpu.pipeline_mode<synchronous>, transform_indices = @transform_6, window_bounds = array<i64: 128, 128>}, {pipeline_mode = #tpu.pipeline_mode<synchronous>, transform_indices = @transform_7, window_bounds = array<i64: 1, 128>}, {pipeline_mode = #tpu.pipeline_mode<synchronous>, transform_indices = @transform_8, window_bounds = array<i64: 1, 128>}, {pipeline_mode = #tpu.pipeline_mode<synchronous>, transform_indices = @transform_9, window_bounds = array<i64: 128, 128>}, {pipeline_mode = #tpu.pipeline_mode<synchronous>, transform_indices = @transform_10, window_bounds = array<i64: 1, 128>}, {pipeline_mode = #tpu.pipeline_mode<synchronous>, transform_indices = @transform_11, window_bounds = array<i64: 1, 128>}, {pipeline_mode = #tpu.pipeline_mode<synchronous>, transform_indices = @transform_12, window_bounds = array<i64: 8, 128>}]} {
    %c0 = arith.constant 0 : index
    %c0_0 = arith.constant 0 : index
    %0 = vector.load %arg1[%c0, %c0_0] : memref<128x128xbf16, #tpu.memory_space<vmem>>, vector<128x128xbf16>
    %c0_1 = arith.constant 0 : index
    %c0_2 = arith.constant 0 : index
    %1 = vector.load %arg4[%c0_1, %c0_2] : memref<128x128xbf16, #tpu.memory_space<vmem>>, vector<128x128xbf16>
    %cst = arith.constant dense<0.000000e+00> : vector<128x128xf32>
    %2 = tpu.matmul %0, %1, %cst {dimension_numbers = #tpu.dot_dimension_numbers<[1], [0], [0], [1], [0, 0, 1, 1], [], []>} : vector<128x128xbf16>, vector<128x128xbf16>, vector<128x128xf32> -> vector<128x128xf32>
    %3 = arith.truncf %2 : vector<128x128xf32> to vector<128x128xbf16>
    %4 = vector.extract_strided_slice %2 {offsets = [0, 127], sizes = [128, 1], strides = [1, 1]} : vector<128x128xf32> to vector<128x1xf32>
    %c0_3 = arith.constant 0 : index
    %c0_4 = arith.constant 0 : index
    %5 = vector.load %arg5[%c0_3, %c0_4] : memref<1x128xbf16, #tpu.memory_space<vmem>>, vector<1x128xbf16>
    %cst_5 = arith.constant dense<0.000000e+00> : vector<1x128xf32>
    %6 = tpu.matmul %5, %3, %cst_5 {dimension_numbers = #tpu.dot_dimension_numbers<[1], [1], [0], [0], [0, 0, 1, 0], [], []>} : vector<1x128xbf16>, vector<128x128xbf16>, vector<1x128xf32> -> vector<1x128xf32>
    %7 = vector.broadcast %4 : vector<128x1xf32> to vector<128x128xf32>
    %8 = vector.broadcast %6 : vector<1x128xf32> to vector<128x128xf32>
    %9 = arith.addf %7, %8 : vector<128x128xf32>
    %cst_6 = arith.constant 0.000000e+00 : f32
    %10 = vector.broadcast %cst_6 : f32 to vector<128x128xf32>
    %11 = arith.cmpf oge, %9, %10 : vector<128x128xf32>
    %cst_7 = arith.constant 2.000000e-01 : f32
    %12 = vector.broadcast %cst_7 : f32 to vector<128x128xf32>
    %13 = arith.mulf %12, %9 : vector<128x128xf32>
    %14 = arith.select %11, %9, %13 : vector<128x128xi1>, vector<128x128xf32>
    %c0_8 = arith.constant 0 : index
    %c0_9 = arith.constant 0 : index
    %15 = vector.load %arg2[%c0_8, %c0_9] : memref<128x128xi8, #tpu.memory_space<vmem>>, vector<128x128xi8>
    %16 = arith.sitofp %15 : vector<128x128xi8> to vector<128x128xf32>
    %cst_10 = arith.constant 0.000000e+00 : f32
    %17 = vector.broadcast %cst_10 : f32 to vector<128x128xf32>
    %18 = arith.cmpf ogt, %16, %17 : vector<128x128xf32>
    %cst_11 = arith.constant -1.000000e+30 : f32
    %19 = vector.broadcast %cst_11 : f32 to vector<128x128xf32>
    %20 = arith.select %18, %14, %19 : vector<128x128xi1>, vector<128x128xf32>
    %cst_12 = arith.constant dense<0xFF800000> : vector<128xf32>
    %21 = vector.multi_reduction <maximumf>, %20, %cst_12 [1] : vector<128x128xf32> to vector<128xf32>
    %22 = vector.shape_cast %21 : vector<128xf32> to vector<128x1xf32>
    %23 = vector.broadcast %22 : vector<128x1xf32> to vector<128x128xf32>
    %24 = arith.subf %20, %23 : vector<128x128xf32>
    %25 = math.exp %24 : vector<128x128xf32>
    %cst_13 = arith.constant dense<0.000000e+00> : vector<128xf32>
    %26 = vector.multi_reduction <add>, %25, %cst_13 [1] : vector<128x128xf32> to vector<128xf32>
    %27 = vector.shape_cast %26 : vector<128xf32> to vector<128x1xf32>
    %cst_14 = arith.constant 1.000000e-30 : f32
    %28 = vector.broadcast %cst_14 : f32 to vector<128x1xf32>
    %29 = arith.maximumf %27, %28 : vector<128x1xf32>
    %30 = tpu.reciprocal %29 {approx = true} : vector<128x1xf32> -> vector<128x1xf32>
    %31 = vector.broadcast %30 : vector<128x1xf32> to vector<128x128xf32>
    %32 = arith.mulf %25, %31 : vector<128x128xf32>
    %33 = arith.truncf %32 : vector<128x128xf32> to vector<128x128xbf16>
    %cst_15 = arith.constant dense<0.000000e+00> : vector<128x128xf32>
    %34 = tpu.matmul %33, %3, %cst_15 {dimension_numbers = #tpu.dot_dimension_numbers<[1], [0], [0], [1], [0, 0, 1, 1], [], []>} : vector<128x128xbf16>, vector<128x128xbf16>, vector<128x128xf32> -> vector<128x128xf32>
    %c0_16 = arith.constant 0 : index
    %c0_17 = arith.constant 0 : index
    %35 = vector.load %arg6[%c0_16, %c0_17] : memref<1x128xf32, #tpu.memory_space<vmem>>, vector<1x128xf32>
    %36 = vector.broadcast %35 : vector<1x128xf32> to vector<128x128xf32>
    %37 = arith.addf %34, %36 : vector<128x128xf32>
    %cst_18 = arith.constant 0.000000e+00 : f32
    %38 = vector.broadcast %cst_18 : f32 to vector<128x128xf32>
    %39 = arith.maximumf %37, %38 : vector<128x128xf32>
    %40 = arith.truncf %39 : vector<128x128xf32> to vector<128x128xbf16>
    %c0_19 = arith.constant 0 : index
    %c0_20 = arith.constant 0 : index
    %41 = vector.load %arg7[%c0_19, %c0_20] : memref<128x128xbf16, #tpu.memory_space<vmem>>, vector<128x128xbf16>
    %cst_21 = arith.constant dense<0.000000e+00> : vector<128x128xf32>
    %42 = tpu.matmul %40, %41, %cst_21 {dimension_numbers = #tpu.dot_dimension_numbers<[1], [0], [0], [1], [0, 0, 1, 1], [], []>} : vector<128x128xbf16>, vector<128x128xbf16>, vector<128x128xf32> -> vector<128x128xf32>
    %43 = arith.truncf %42 : vector<128x128xf32> to vector<128x128xbf16>
    %44 = vector.extract_strided_slice %42 {offsets = [0, 127], sizes = [128, 1], strides = [1, 1]} : vector<128x128xf32> to vector<128x1xf32>
    %c0_22 = arith.constant 0 : index
    %c0_23 = arith.constant 0 : index
    %45 = vector.load %arg8[%c0_22, %c0_23] : memref<1x128xbf16, #tpu.memory_space<vmem>>, vector<1x128xbf16>
    %cst_24 = arith.constant dense<0.000000e+00> : vector<1x128xf32>
    %46 = tpu.matmul %45, %43, %cst_24 {dimension_numbers = #tpu.dot_dimension_numbers<[1], [1], [0], [0], [0, 0, 1, 0], [], []>} : vector<1x128xbf16>, vector<128x128xbf16>, vector<1x128xf32> -> vector<1x128xf32>
    %47 = vector.broadcast %44 : vector<128x1xf32> to vector<128x128xf32>
    %48 = vector.broadcast %46 : vector<1x128xf32> to vector<128x128xf32>
    %49 = arith.addf %47, %48 : vector<128x128xf32>
    %cst_25 = arith.constant 0.000000e+00 : f32
    %50 = vector.broadcast %cst_25 : f32 to vector<128x128xf32>
    %51 = arith.cmpf oge, %49, %50 : vector<128x128xf32>
    %cst_26 = arith.constant 2.000000e-01 : f32
    %52 = vector.broadcast %cst_26 : f32 to vector<128x128xf32>
    %53 = arith.mulf %52, %49 : vector<128x128xf32>
    %54 = arith.select %51, %49, %53 : vector<128x128xi1>, vector<128x128xf32>
    %c0_27 = arith.constant 0 : index
    %c0_28 = arith.constant 0 : index
    %55 = vector.load %arg2[%c0_27, %c0_28] : memref<128x128xi8, #tpu.memory_space<vmem>>, vector<128x128xi8>
    %56 = arith.sitofp %55 : vector<128x128xi8> to vector<128x128xf32>
    %cst_29 = arith.constant 0.000000e+00 : f32
    %57 = vector.broadcast %cst_29 : f32 to vector<128x128xf32>
    %58 = arith.cmpf ogt, %56, %57 : vector<128x128xf32>
    %cst_30 = arith.constant -1.000000e+30 : f32
    %59 = vector.broadcast %cst_30 : f32 to vector<128x128xf32>
    %60 = arith.select %58, %54, %59 : vector<128x128xi1>, vector<128x128xf32>
    %cst_31 = arith.constant dense<0xFF800000> : vector<128xf32>
    %61 = vector.multi_reduction <maximumf>, %60, %cst_31 [1] : vector<128x128xf32> to vector<128xf32>
    %62 = vector.shape_cast %61 : vector<128xf32> to vector<128x1xf32>
    %63 = vector.broadcast %62 : vector<128x1xf32> to vector<128x128xf32>
    %64 = arith.subf %60, %63 : vector<128x128xf32>
    %65 = math.exp %64 : vector<128x128xf32>
    %cst_32 = arith.constant dense<0.000000e+00> : vector<128xf32>
    %66 = vector.multi_reduction <add>, %65, %cst_32 [1] : vector<128x128xf32> to vector<128xf32>
    %67 = vector.shape_cast %66 : vector<128xf32> to vector<128x1xf32>
    %cst_33 = arith.constant 1.000000e-30 : f32
    %68 = vector.broadcast %cst_33 : f32 to vector<128x1xf32>
    %69 = arith.maximumf %67, %68 : vector<128x1xf32>
    %70 = tpu.reciprocal %69 {approx = true} : vector<128x1xf32> -> vector<128x1xf32>
    %71 = vector.broadcast %70 : vector<128x1xf32> to vector<128x128xf32>
    %72 = arith.mulf %65, %71 : vector<128x128xf32>
    %73 = arith.truncf %72 : vector<128x128xf32> to vector<128x128xbf16>
    %cst_34 = arith.constant dense<0.000000e+00> : vector<128x128xf32>
    %74 = tpu.matmul %73, %43, %cst_34 {dimension_numbers = #tpu.dot_dimension_numbers<[1], [0], [0], [1], [0, 0, 1, 1], [], []>} : vector<128x128xbf16>, vector<128x128xbf16>, vector<128x128xf32> -> vector<128x128xf32>
    %c0_35 = arith.constant 0 : index
    %c0_36 = arith.constant 0 : index
    %75 = vector.load %arg9[%c0_35, %c0_36] : memref<1x128xf32, #tpu.memory_space<vmem>>, vector<1x128xf32>
    %76 = vector.broadcast %75 : vector<1x128xf32> to vector<128x128xf32>
    %77 = arith.addf %74, %76 : vector<128x128xf32>
    %cst_37 = arith.constant 0.000000e+00 : f32
    %78 = vector.broadcast %cst_37 : f32 to vector<128x128xf32>
    %79 = arith.maximumf %77, %78 : vector<128x128xf32>
    %80 = arith.truncf %79 : vector<128x128xf32> to vector<128x128xbf16>
    %c0_38 = arith.constant 0 : index
    %c0_39 = arith.constant 0 : index
    %81 = vector.load %arg10[%c0_38, %c0_39] : memref<128x128xbf16, #tpu.memory_space<vmem>>, vector<128x128xbf16>
    %cst_40 = arith.constant dense<0.000000e+00> : vector<128x128xf32>
    %82 = tpu.matmul %80, %81, %cst_40 {dimension_numbers = #tpu.dot_dimension_numbers<[1], [0], [0], [1], [0, 0, 1, 1], [], []>} : vector<128x128xbf16>, vector<128x128xbf16>, vector<128x128xf32> -> vector<128x128xf32>
    %83 = arith.truncf %82 : vector<128x128xf32> to vector<128x128xbf16>
    %84 = vector.extract_strided_slice %82 {offsets = [0, 127], sizes = [128, 1], strides = [1, 1]} : vector<128x128xf32> to vector<128x1xf32>
    %c0_41 = arith.constant 0 : index
    %c0_42 = arith.constant 0 : index
    %85 = vector.load %arg11[%c0_41, %c0_42] : memref<1x128xbf16, #tpu.memory_space<vmem>>, vector<1x128xbf16>
    %cst_43 = arith.constant dense<0.000000e+00> : vector<1x128xf32>
    %86 = tpu.matmul %85, %83, %cst_43 {dimension_numbers = #tpu.dot_dimension_numbers<[1], [1], [0], [0], [0, 0, 1, 0], [], []>} : vector<1x128xbf16>, vector<128x128xbf16>, vector<1x128xf32> -> vector<1x128xf32>
    %87 = vector.broadcast %84 : vector<128x1xf32> to vector<128x128xf32>
    %88 = vector.broadcast %86 : vector<1x128xf32> to vector<128x128xf32>
    %89 = arith.addf %87, %88 : vector<128x128xf32>
    %cst_44 = arith.constant 0.000000e+00 : f32
    %90 = vector.broadcast %cst_44 : f32 to vector<128x128xf32>
    %91 = arith.cmpf oge, %89, %90 : vector<128x128xf32>
    %cst_45 = arith.constant 2.000000e-01 : f32
    %92 = vector.broadcast %cst_45 : f32 to vector<128x128xf32>
    %93 = arith.mulf %92, %89 : vector<128x128xf32>
    %94 = arith.select %91, %89, %93 : vector<128x128xi1>, vector<128x128xf32>
    %c0_46 = arith.constant 0 : index
    %c0_47 = arith.constant 0 : index
    %95 = vector.load %arg2[%c0_46, %c0_47] : memref<128x128xi8, #tpu.memory_space<vmem>>, vector<128x128xi8>
    %96 = arith.sitofp %95 : vector<128x128xi8> to vector<128x128xf32>
    %cst_48 = arith.constant 0.000000e+00 : f32
    %97 = vector.broadcast %cst_48 : f32 to vector<128x128xf32>
    %98 = arith.cmpf ogt, %96, %97 : vector<128x128xf32>
    %cst_49 = arith.constant -1.000000e+30 : f32
    %99 = vector.broadcast %cst_49 : f32 to vector<128x128xf32>
    %100 = arith.select %98, %94, %99 : vector<128x128xi1>, vector<128x128xf32>
    %cst_50 = arith.constant dense<0xFF800000> : vector<128xf32>
    %101 = vector.multi_reduction <maximumf>, %100, %cst_50 [1] : vector<128x128xf32> to vector<128xf32>
    %102 = vector.shape_cast %101 : vector<128xf32> to vector<128x1xf32>
    %103 = vector.broadcast %102 : vector<128x1xf32> to vector<128x128xf32>
    %104 = arith.subf %100, %103 : vector<128x128xf32>
    %105 = math.exp %104 : vector<128x128xf32>
    %cst_51 = arith.constant dense<0.000000e+00> : vector<128xf32>
    %106 = vector.multi_reduction <add>, %105, %cst_51 [1] : vector<128x128xf32> to vector<128xf32>
    %107 = vector.shape_cast %106 : vector<128xf32> to vector<128x1xf32>
    %cst_52 = arith.constant 1.000000e-30 : f32
    %108 = vector.broadcast %cst_52 : f32 to vector<128x1xf32>
    %109 = arith.maximumf %107, %108 : vector<128x1xf32>
    %110 = tpu.reciprocal %109 {approx = true} : vector<128x1xf32> -> vector<128x1xf32>
    %111 = vector.broadcast %110 : vector<128x1xf32> to vector<128x128xf32>
    %112 = arith.mulf %105, %111 : vector<128x128xf32>
    %113 = arith.truncf %112 : vector<128x128xf32> to vector<128x128xbf16>
    %cst_53 = arith.constant dense<0.000000e+00> : vector<128x128xf32>
    %114 = tpu.matmul %113, %83, %cst_53 {dimension_numbers = #tpu.dot_dimension_numbers<[1], [0], [0], [1], [0, 0, 1, 1], [], []>} : vector<128x128xbf16>, vector<128x128xbf16>, vector<128x128xf32> -> vector<128x128xf32>
    %c0_54 = arith.constant 0 : index
    %c0_55 = arith.constant 0 : index
    %115 = vector.load %arg12[%c0_54, %c0_55] : memref<1x128xf32, #tpu.memory_space<vmem>>, vector<1x128xf32>
    %116 = vector.broadcast %115 : vector<1x128xf32> to vector<128x128xf32>
    %117 = arith.addf %114, %116 : vector<128x128xf32>
    %c0_56 = arith.constant 0 : index
    %c0_57 = arith.constant 0 : index
    %118 = vector.load %arg3[%c0_56, %c0_57] : memref<8x128xbf16, #tpu.memory_space<vmem>>, vector<8x128xbf16>
    %119 = arith.truncf %117 : vector<128x128xf32> to vector<128x128xbf16>
    %cst_58 = arith.constant dense<0.000000e+00> : vector<8x128xf32>
    %120 = tpu.matmul %118, %119, %cst_58 {dimension_numbers = #tpu.dot_dimension_numbers<[1], [0], [0], [1], [0, 0, 1, 1], [], []>} : vector<8x128xbf16>, vector<128x128xbf16>, vector<8x128xf32> -> vector<8x128xf32>
    %c0_59 = arith.constant 0 : index
    %c0_60 = arith.constant 0 : index
    %121 = vector.load %arg13[%c0_59, %c0_60] : memref<8x128xf32, #tpu.memory_space<vmem>>, vector<8x128xf32>
    tpu.vector_store %arg13[%c0_59, %c0_60], %120 {strides = array<i32>} : memref<8x128xf32, #tpu.memory_space<vmem>>, vector<8x128xf32>,
    return
  }
  func.func @transform_0(%arg0: i32) -> (i32, i32) {
    %c0_i32 = arith.constant 0 : i32
    %c0_i32_0 = arith.constant 0 : i32
    %c0_i32_1 = arith.constant 0 : i32
    return %c0_i32, %c0_i32_0 : i32, i32
  }
  func.func @transform_1(%arg0: i32) -> (i32, i32) {
    %c0_i32 = arith.constant 0 : i32
    %c0_i32_0 = arith.constant 0 : i32
    %c0_i32_1 = arith.constant 0 : i32
    return %c0_i32, %c0_i32_0 : i32, i32
  }
  func.func @transform_2(%arg0: i32) -> (i32, i32) {
    %c0_i32 = arith.constant 0 : i32
    %c0_i32_0 = arith.constant 0 : i32
    %c0_i32_1 = arith.constant 0 : i32
    return %c0_i32, %c0_i32_0 : i32, i32
  }
  func.func @transform_3(%arg0: i32) -> (i32, i32) {
    %c0_i32 = arith.constant 0 : i32
    %c0_i32_0 = arith.constant 0 : i32
    %c0_i32_1 = arith.constant 0 : i32
    return %c0_i32, %c0_i32_0 : i32, i32
  }
  func.func @transform_4(%arg0: i32) -> (i32, i32) {
    %c0_i32 = arith.constant 0 : i32
    %c0_i32_0 = arith.constant 0 : i32
    %c0_i32_1 = arith.constant 0 : i32
    return %c0_i32, %c0_i32_0 : i32, i32
  }
  func.func @transform_5(%arg0: i32) -> (i32, i32) {
    %c0_i32 = arith.constant 0 : i32
    %c0_i32_0 = arith.constant 0 : i32
    %c0_i32_1 = arith.constant 0 : i32
    return %c0_i32, %c0_i32_0 : i32, i32
  }
  func.func @transform_6(%arg0: i32) -> (i32, i32) {
    %c0_i32 = arith.constant 0 : i32
    %c0_i32_0 = arith.constant 0 : i32
    %c0_i32_1 = arith.constant 0 : i32
    return %c0_i32, %c0_i32_0 : i32, i32
  }
  func.func @transform_7(%arg0: i32) -> (i32, i32) {
    %c0_i32 = arith.constant 0 : i32
    %c0_i32_0 = arith.constant 0 : i32
    %c0_i32_1 = arith.constant 0 : i32
    return %c0_i32, %c0_i32_0 : i32, i32
  }
  func.func @transform_8(%arg0: i32) -> (i32, i32) {
    %c0_i32 = arith.constant 0 : i32
    %c0_i32_0 = arith.constant 0 : i32
    %c0_i32_1 = arith.constant 0 : i32
    return %c0_i32, %c0_i32_0 : i32, i32
  }
  func.func @transform_9(%arg0: i32) -> (i32, i32) {
    %c0_i32 = arith.constant 0 : i32
    %c0_i32_0 = arith.constant 0 : i32
    %c0_i32_1 = arith.constant 0 : i32
    return %c0_i32, %c0_i32_0 : i32, i32
  }
  func.func @transform_10(%arg0: i32) -> (i32, i32) {
    %c0_i32 = arith.constant 0 : i32
    %c0_i32_0 = arith.constant 0 : i32
    %c0_i32_1 = arith.constant 0 : i32
    return %c0_i32, %c0_i32_0 : i32, i32
  }
  func.func @transform_11(%arg0: i32) -> (i32, i32) {
    %c0_i32 = arith.constant 0 : i32
    %c0_i32_0 = arith.constant 0 : i32
    %c0_i32_1 = arith.constant 0 : i32
    return %c0_i32, %c0_i32_0 : i32, i32
  }
  func.func @transform_12(%arg0: i32) -> (i32, i32) {
    %c0_i32 = arith.constant 0 : i32
    %c0_i32_0 = arith.constant 0 : i32
    %c0_i32_1 = arith.constant 0 : i32
    return %c0_i32, %c0_i32_0 : i32, i32
  }
}

</mosaic_0001>

<bundles_post_ra>
// kernel: tpu_custom_call.1
= control target key start
LH: loop header
LB: loop body
LE: loop exit
PB: predicated region body
PF: predicated region fallthrough
CT: control target
= control target key end

     0   :  { %17 = vsyncpa [#allocation3], 0  ;;  %s3272_s0 = inlined_call_operand.hbm [shape: bf16[128,128], index: 0, kind: input, shape index: {}]   ;;  %s3273_s1 = inlined_call_operand.hbm [shape: s8[128,128], index: 1, kind: input, shape index: {}]   ;;  %s3274_s2 = inlined_call_operand.hbm [shape: bf16[8,128], index: 2, kind: input, shape index: {}]   ;;  %s3275_s3 = inlined_call_operand.hbm [shape: bf16[128,128], index: 3, kind: input, shape index: {}]   ;;  %s3276_s4 = inlined_call_operand.vmem [shape: bf16[1,128], index: 4, kind: input, shape index: {}]   ;;  %s3277_s5 = inlined_call_operand.vmem [shape: f32[1,128], index: 5, kind: input, shape index: {}]   ;;  %s3278_s6 = inlined_call_operand.hbm [shape: bf16[128,128], index: 6, kind: input, shape index: {}]   ;;  %s3279_s7 = inlined_call_operand.vmem [shape: bf16[1,128], index: 7, kind: input, shape index: {}]   ;;  %s3280_s8 = inlined_call_operand.vmem [shape: f32[1,128], index: 8, kind: input, shape index: {}]   ;;  %s3281_s9 = inlined_call_operand.hbm [shape: bf16[128,128], index: 9, kind: input, shape index: {}]   ;;  %s3282_s10 = inlined_call_operand.vmem [shape: bf16[1,128], index: 10, kind: input, shape index: {}]   ;;  %s3283_s11 = inlined_call_operand.vmem [shape: f32[1,128], index: 11, kind: input, shape index: {}]   ;;  %s3284_s12 = inlined_call_operand.hbm [shape: f32[8,128], index: 12, kind: output, shape index: {}]  }
   0x1   :  { %18 = vsyncpa [#allocation6], 0 }
   0x2   :  { %19 = vsyncpa [#allocation9], 0 }
   0x3   :  { %20 = vsyncpa [#allocation12], 0  ;;  %s39_s23 = sshll.u32 %s3273_s1, 4  ;;  %s40_s23 = int_to_ptr.hbm [resolvable:$true] %s39_s23 }
   0x4   :  { %21 = vsyncpa [#allocation4], 0  ;;  %s2440_s24 = smov [#allocation5]   ;;  %s2441_s26 = smov 128  }
   0x5   :  { %s41_s25 = sshll.u32 %s2440_s24, 4  ;;  %s2442_s27 = smov 8   ;;  %s42_s25 = int_to_ptr.vmem [resolvable:$true] %s41_s25 }
   0x6   :  { %47 = dma.hbm_to_vmem [thread:$0]  %s40_s23, 512, %s42_s25, [#allocation6], %s2441_s26, %s2441_s26, %s2442_s27  }
   0x7   :  { %s63_s30 = sshll.u32 %s3275_s3, 4  ;;  %s2443_s13 = smov [#allocation8]   ;;  %s64_s30 = int_to_ptr.hbm [resolvable:$true] %s63_s30 }
   0x8   :  { %s65_s14 = sshll.u32 %s2443_s13, 4  ;;  %s26_s17 = sshll.u32 %s3272_s0, 4  ;;  %s66_s14 = int_to_ptr.vmem [resolvable:$true] %s65_s14  ;;  %s27_s17 = int_to_ptr.hbm [resolvable:$true] %s26_s17 }
   0x9   :  { %s2444_s1 = smov 64   ;;  %s2445_s18 = smov 4  }
   0xa   :  { %71 = dma.hbm_to_vmem [thread:$0]  %s64_s30, 1024, %s66_s14, [#allocation9], %s2444_s1, %s2444_s1, %s2445_s18  }
   0xb   :  { %s53_s21 = sshll.u32 %s3274_s2, 4  ;;  %s2446_s22 = smov [#allocation2]   ;;  %s54_s21 = int_to_ptr.hbm [resolvable:$true] %s53_s21 }
   0xc   :  { %s28_s23 = sshll.u32 %s2446_s22, 4  ;;  %s2447_s3 = smov [#allocation7]   ;;  %s29_s23 = int_to_ptr.vmem [resolvable:$true] %s28_s23 }
   0xd   :  { %34 = dma.hbm_to_vmem [thread:$0]  %s27_s17, 1024, %s29_s23, [#allocation3], %s2444_s1, %s2444_s1, %s2445_s18  }
   0xe   :  { %s55_s24 = sshll.u32 %s2447_s3, 4  ;;  %s80_s0 = sshll.u32 %s3278_s6, 4  ;;  %s56_s24 = int_to_ptr.vmem [resolvable:$true] %s55_s24  ;;  %s81_s0 = int_to_ptr.hbm [resolvable:$true] %s80_s0 }
   0xf   :  { %58 = dma.hbm_to_vmem [thread:$0]  %s54_s21, 64, %s56_s24, [#allocation6]  }
  0x10   :  { %s97_s29 = sshll.u32 %s3281_s9, 4  ;;  %s2448_s30 = smov [#allocation10]   ;;  %s98_s29 = int_to_ptr.hbm [resolvable:$true] %s97_s29 }
  0x11   :  { %s82_s2 = sshll.u32 %s2448_s30, 4  ;;  %s2449_s13 = smov [#allocation11]   ;;  %s83_s2 = int_to_ptr.vmem [resolvable:$true] %s82_s2 }
  0x12   :  { %88 = dma.hbm_to_vmem [thread:$0]  %s81_s0, 1024, %s83_s2, [#allocation9], %s2444_s1, %s2444_s1, %s2445_s18  }
  0x13   :  { %s99_s14 = sshll.u32 %s2449_s13, 4  ;;  %s100_s14 = int_to_ptr.vmem [resolvable:$true] %s99_s14 }
  0x14   :  { %105 = dma.hbm_to_vmem [thread:$0]  %s98_s29, 1024, %s100_s14, [#allocation12], %s2444_s1, %s2444_s1, %s2445_s18  }
  0x15   :  { %2430 = dma.done.wait [#allocation3], 1024  }
  0x16   :  { %2431 = vsyncadd [#allocation3], 4294966272 }
  0x17   :  { %2432 = dma.done.wait [#allocation6], 576  }
  0x18   :  { %2433 = vsyncadd [#allocation6], 4294966720 }
  0x19   :  { %2434 = dma.done.wait [#allocation9], 2048  }
  0x1a   :  { %2435 = vsyncadd [#allocation9], 4294965248 }
  0x1b   :  { %2436 = dma.done.wait [#allocation12], 1024  }
  0x1c   :  { %2437 = vsyncadd [#allocation12], 4294966272  ;;  %v2035_v0 = vld [vmem:[#allocation8 + $0x38] sm:$0xff]  ;;  %v2034_v1 = vld [vmem:[#allocation8 + $0x30] sm:$0xff]  ;;  %v2450_v14 = vmov 127   ;;  %s1879_s22 = sshll.u32 %s3284_s12, 4  ;;  %s1880_s22 = int_to_ptr.hbm [resolvable:$true] %s1879_s22 }
  0x1d   :  { %262 = vmatpush.bf16.msra.mxu0 %v2035_v0  ;;  %v2033_v2 = vld [vmem:[#allocation8 + $0x28] sm:$0xff]  ;;  %v2032_v3 = vld [vmem:[#allocation8 + $0x20] sm:$0xff]  ;;  %v2031_v4 = vld [vmem:[#allocation8 + $0x18] sm:$0xff]  ;;  %2064 = vset.pattern.permute.xlu0 %v2450_v14 }
  0x1e   :  { %v2030_v5 = vld [vmem:[#allocation8 + $0x10] sm:$0xff]  ;;  %v2029_v6 = vld [vmem:[#allocation8 + $0x8] sm:$0xff]  ;;  %v2028_v7 = vld [vmem:[#allocation8] sm:$0xff]  ;;  %2065 = vset.pattern.permute.xlu1 %v2450_v14  ;;  %2066 = vset.pattern.permute.xlu2 %v2450_v14 }
  0x1f   :  { %v2020_v8 = vld [vmem:[#allocation2] sm:$0xff]  ;;  %v2021_v9 = vld [vmem:[#allocation2 + $0x8] sm:$0xff]  ;;  %v2022_v10 = vld [vmem:[#allocation2 + $0x10] sm:$0xff] }
  0x20   :  { %v2023_v11 = vld [vmem:[#allocation2 + $0x18] sm:$0xff]  ;;  %v2024_v12 = vld [vmem:[#allocation2 + $0x20] sm:$0xff]  ;;  %v2025_v13 = vld [vmem:[#allocation2 + $0x28] sm:$0xff] }
  0x21   :  { %263 = vmatpush.bf16.msra.mxu0 %v2034_v1  ;;  %v2026_v15 = vld [vmem:[#allocation2 + $0x30] sm:$0xff]  ;;  %v2027_v16 = vld [vmem:[#allocation2 + $0x38] sm:$0xff]  ;;  %v319_v41 = vld [vmem:[%s3276_s4] sm:$0x1] }
  0x22   :  { %v478_v45 = vld [vmem:[#allocation5] sm:$0xff]  ;;  %v2550_v52 = vld [vmem:[#allocation5 + $0x8] sm:$0xff] }
  0x23   :  { %v484_v48 = vunpack.c.2.s8 %v478_v45  ;;  %v483_v49 = vunpack.c.1.s8 %v478_v45  ;;  %v482_v50 = vunpack.c.0.s8 %v478_v45  ;;  %v486_v58 = vunpack.c.0.s8 %v2550_v52 }
  0x24   :  { %v489_v59 = vunpack.c.3.s8 %v2550_v52 }
  0x25   :  { %264 = vmatpush.bf16.msra.mxu0 %v2033_v2  ;;  %v2548_v51 = vcvt.s32.f32 %v484_v48  ;;  %v2552_v54 = vcvt.s32.f32 %v483_v49  ;;  %v2554_v55 = vcvt.s32.f32 %v482_v50 }
  0x27   :  { %vm3288_vm0 = vcmp.gt.f32.partialorder %v2548_v51, 0.0  ;;  %vm515_vm1 = vcmp.gt.f32.partialorder %v2552_v54, 0.0  ;;  %vm514_vm2 = vcmp.gt.f32.partialorder %v2554_v55, 0.0 }
  0x29   :  { %265 = vmatpush.bf16.msra.mxu0 %v2032_v3 }
  0x2d   :  { %266 = vmatpush.bf16.msra.mxu0 %v2031_v4 }
  0x31   :  { %267 = vmatpush.bf16.msra.mxu0 %v2030_v5 }
  0x35   :  { %268 = vmatpush.bf16.msra.mxu0 %v2029_v6 }
  0x39   :  { %269 = vmatpush.bf16.msra.mxu0 %v2028_v7  ;;  %v485_v7 = vunpack.c.3.s8 %v478_v45 }
  0x3c   :  { %270 = vmatmul.bf16.vlgmr.msra.gmra.mxu0 %v2020_v8 }
  0x4c   :  { %275 = vmatmul.bf16.gmra.mxu0 %v2021_v9 }
  0x5c   :  { %280 = vmatmul.bf16.gmra.mxu0 %v2022_v10  ;;  %v2569_v10 = vcvt.s32.f32 %v486_v58 }
  0x5e   :  { %vm518_vm9 = vcmp.gt.f32.partialorder %v2569_v10, 0.0 }
  0x6c   :  { %285 = vmatmul.bf16.gmra.mxu0 %v2023_v11 }
  0x7c   :  { %290 = vmatmul.bf16.gmra.mxu0 %v2024_v12 }
  0x8c   :  { %295 = vmatmul.bf16.gmra.mxu0 %v2025_v13 }
  0x9c   :  { %300 = vmatmul.bf16.gmra.mxu0 %v2026_v15  ;;  %v2579_v15 = vcvt.s32.f32 %v489_v59 }
  0x9e   :  { %vm521_vm10 = vcmp.gt.f32.partialorder %v2579_v15, 0.0 }
  0xac   :  { %305 = vmatmul.bf16.gmra.mxu0 %v2027_v16  ;;  %v2581_v16 = vld [vmem:[#allocation5 + $0x10] sm:$0xff] }
  0xb9   :  { %v271_v17 = vpop.f32.mrf.mxu0 }
  0xba   :  { %335 = vperm.xlu0 %2064, %v271_v17  }
  0xc1   :  { %v273_v18 = vpop.f32.mrf.mxu0 }
  0xc2   :  { %340 = vperm.xlu0 %2064, %v273_v18   ;;  %v311_v40 = vpack.c.bf16 %v273_v18, %v271_v17 }
  0xc9   :  { %v276_v19 = vpop.f32.mrf.mxu0 }
  0xca   :  { %345 = vperm.xlu1 %2065, %v276_v19  }
  0xd1   :  { %v278_v20 = vpop.f32.mrf.mxu0 }
  0xd2   :  { %350 = vperm.xlu1 %2065, %v278_v20   ;;  %v312_v39 = vpack.c.bf16 %v278_v20, %v276_v19 }
  0xd9   :  { %v281_v21 = vpop.f32.mrf.mxu0 }
  0xda   :  { %355 = vperm.xlu2 %2066, %v281_v21  }
  0xe1   :  { %v283_v22 = vpop.f32.mrf.mxu0 }
  0xe2   :  { %360 = vperm.xlu2 %2066, %v283_v22   ;;  %v313_v38 = vpack.c.bf16 %v283_v22, %v281_v21  ;;  %v2590_v21 = vcvt.s32.f32 %v485_v7 }
  0xe4   :  { %vm517_vm11 = vcmp.gt.f32.partialorder %v2590_v21, 0.0 }
  0xe9   :  { %v286_v23 = vpop.f32.mrf.mxu0 }
  0xea   :  { %365 = vperm.xlu2 %2066, %v286_v23  }
  0xf1   :  { %v288_v24 = vpop.f32.mrf.mxu0 }
  0xf2   :  { %370 = vperm.xlu2 %2066, %v288_v24   ;;  %v314_v37 = vpack.c.bf16 %v288_v24, %v286_v23  ;;  %v487_v23 = vunpack.c.1.s8 %v2550_v52  ;;  %v490_v24 = vunpack.c.0.s8 %v2581_v16 }
  0xf9   :  { %v291_v25 = vpop.f32.mrf.mxu0 }
  0xfa   :  { %375 = vperm.xlu1 %2065, %v291_v25  }
 0x101   :  { %v293_v26 = vpop.f32.mrf.mxu0 }
 0x102   :  { %380 = vperm.xlu0 %2064, %v293_v26   ;;  %v315_v36 = vpack.c.bf16 %v293_v26, %v291_v25 }
 0x109   :  { %v296_v27 = vpop.f32.mrf.mxu0 }
 0x10a   :  { %385 = vperm.xlu1 %2065, %v296_v27  }
 0x111   :  { %v298_v28 = vpop.f32.mrf.mxu0 }
 0x112   :  { %390 = vperm.xlu0 %2064, %v298_v28   ;;  %v316_v35 = vpack.c.bf16 %v298_v28, %v296_v27 }
 0x119   :  { %v301_v29 = vpop.f32.mrf.mxu0 }
 0x11a   :  { %395 = vperm.xlu0 %2064, %v301_v29  }
 0x121   :  { %v303_v30 = vpop.f32.mrf.mxu0 }
 0x122   :  { %400 = vperm.xlu2 %2066, %v303_v30   ;;  %v317_v34 = vpack.c.bf16 %v303_v30, %v301_v29 }
 0x129   :  { %v2535_v31 = vpop.f32.mrf.mxu0 }
 0x12c   :  { %v336_v44 = vpop.permute.xlu0 %335 }
 0x131   :  { %v2537_v32 = vpop.f32.mrf.mxu0 }
 0x132   :  { %v318_v33 = vpack.c.bf16 %v2537_v32, %v2535_v31 }
 0x134   :  { %320 = vmatpush.bf16.xpose.msra.mxu1 %v318_v33  ;;  %718 = vmatpush.bf16.msra.mxu2 %v318_v33  ;;  %v356_v42 = vpop.permute.xlu2 %355  ;;  %v341_v57 = vpop.permute.xlu0 %340 }
 0x138   :  { %719 = vmatpush.bf16.msra.mxu2 %v317_v34 }
 0x13c   :  { %321 = vmatpush.bf16.xpose.msra.mxu1 %v317_v34  ;;  %720 = vmatpush.bf16.msra.mxu2 %v316_v35  ;;  %v2544_v43 = vpop.permute.xlu2 %360  ;;  %v346_v47 = vpop.permute.xlu1 %345  ;;  %v2608_v34 = vcvt.s32.f32 %v487_v23 }
 0x13e   :  { %vm519_vm14 = vcmp.gt.f32.partialorder %v2608_v34, 0.0 }
 0x140   :  { %721 = vmatpush.bf16.msra.mxu2 %v315_v36 }
 0x144   :  { %322 = vmatpush.bf16.xpose.msra.mxu1 %v316_v35  ;;  %722 = vmatpush.bf16.msra.mxu2 %v314_v37  ;;  %v2546_v46 = vpop.permute.xlu2 %365  ;;  %v351_v0 = vpop.permute.xlu1 %350  ;;  %v2610_v35 = vcvt.s32.f32 %v490_v24 }
 0x146   :  { %vm522_vm15 = vcmp.gt.f32.partialorder %v2610_v35, 0.0 }
 0x148   :  { %723 = vmatpush.bf16.msra.mxu2 %v313_v38 }
 0x14c   :  { %323 = vmatpush.bf16.xpose.msra.mxu1 %v315_v36  ;;  %724 = vmatpush.bf16.msra.mxu2 %v312_v39  ;;  %v371_v60 = vpop.permute.xlu2 %370 }
 0x150   :  { %725 = vmatpush.bf16.msra.mxu2 %v311_v40 }
 0x154   :  { %324 = vmatpush.bf16.xpose.msra.mxu1 %v314_v37 }
 0x15c   :  { %325 = vmatpush.bf16.xpose.msra.mxu1 %v313_v38 }
 0x164   :  { %326 = vmatpush.bf16.xpose.msra.mxu1 %v312_v39 }
 0x16c   :  { %327 = vmatpush.bf16.xpose.msra.mxu1 %v311_v40  ;;  %v376_v22 = vpop.permute.xlu1 %375  ;;  %v488_v40 = vunpack.c.2.s8 %v2550_v52 }
 0x16e   :  { %v2636_v50 = vcvt.s32.f32 %v488_v40 }
 0x173   :  { %328 = vmatmul.bf16.vlgmr.msra.gmra.mxu1 %v319_v41  ;;  %v491_v41 = vunpack.c.1.s8 %v2581_v16 }
 0x174   :  { %v381_v39 = vpop.permute.xlu0 %380 }
 0x1f0   :  { %v329_v53 = vpop.f32.mrf.mxu1 }
 0x1f1   :  { %v2556_v56 = vperm.slane %v329_v53, 0  ;;  %v2638_v53 = vcvt.s32.f32 %v491_v41 }
 0x1f3   :  { %v416_v61 = vadd.f32 %v2556_v56, %v346_v47  ;;  %v415_v62 = vadd.f32 %v2556_v56, %v341_v57  ;;  %v414_v63 = vadd.f32 %v2556_v56, %v336_v44  ;;  %v418_v1 = vadd.f32 %v2556_v56, %v356_v42 }
 0x1f4   :  { %v421_v2 = vadd.f32 %v2556_v56, %v371_v60  ;;  %v417_v6 = vadd.f32 %v2556_v56, %v351_v0  ;;  %v419_v27 = vadd.f32 %v2556_v56, %v2544_v43  ;;  %v422_v28 = vadd.f32 %v2556_v56, %v376_v22  ;;  %v391_v60 = vpop.permute.xlu0 %390 }
 0x1f5   :  { %vm432_vm3 = vcmp.ge.f32.partialorder %v416_v61, 0.0  ;;  %v448_v3 = vmul.f32 0.2, %v416_v61  ;;  %vm431_vm4 = vcmp.ge.f32.partialorder %v415_v62, 0.0  ;;  %v447_v4 = vmul.f32 0.2, %v415_v62 }
 0x1f6   :  { %vm430_vm5 = vcmp.ge.f32.partialorder %v414_v63, 0.0  ;;  %v446_v5 = vmul.f32 0.2, %v414_v63  ;;  %v450_v18 = vmul.f32 0.2, %v418_v1  ;;  %vm434_vm6 = vcmp.ge.f32.partialorder %v418_v1, 0.0 }
 0x1f7   :  { %v464_v8 = vsel %vm432_vm3, %v416_v61, %v448_v3  ;;  %v463_v9 = vsel %vm431_vm4, %v415_v62, %v447_v4  ;;  %v453_v19 = vmul.f32 0.2, %v421_v2  ;;  %vm437_vm7 = vcmp.ge.f32.partialorder %v421_v2, 0.0  ;;  %v386_v3 = vpop.permute.xlu1 %385  ;;  %v401_v4 = vpop.permute.xlu2 %400 }
 0x1f8   :  { %v331_v11 = vpop.f32.mrf.mxu1  ;;  %v2573_v12 = vsel %vm3288_vm0, %v464_v8, -1e+30  ;;  %v2577_v13 = vsel %vm515_vm1, %v463_v9, -1e+30  ;;  %v462_v14 = vsel %vm430_vm5, %v414_v63, %v446_v5  ;;  %v449_v20 = vmul.f32 0.2, %v417_v6 }
 0x1f9   :  { %550 = vmax.xlane.f32.xlu2 %v2573_v12  ;;  %548 = vmax.xlane.f32.xlu1 %v2577_v13  ;;  %v2587_v17 = vsel %vm514_vm2, %v462_v14, -1e+30  ;;  %vm433_vm8 = vcmp.ge.f32.partialorder %v417_v6, 0.0  ;;  %v466_v25 = vsel %vm434_vm6, %v418_v1, %v450_v18  ;;  %v469_v26 = vsel %vm437_vm7, %v421_v2, %v453_v19 }
 0x1fa   :  { %546 = vmax.xlane.f32.xlu0 %v2587_v17  ;;  %v465_v29 = vsel %vm433_vm8, %v417_v6, %v449_v20  ;;  %v2602_v30 = vsel %vm518_vm9, %v466_v25, -1e+30  ;;  %v2606_v33 = vsel %vm521_vm10, %v469_v26, -1e+30  ;;  %v451_v37 = vmul.f32 0.2, %v419_v27 }
 0x1fb   :  { %v2616_v36 = vsel %vm517_vm11, %v465_v29, -1e+30  ;;  %v454_v38 = vmul.f32 0.2, %v422_v28  ;;  %vm435_vm12 = vcmp.ge.f32.partialorder %v419_v27, 0.0  ;;  %vm438_vm13 = vcmp.ge.f32.partialorder %v422_v28, 0.0 }
 0x1fc   :  { %v467_v42 = vsel %vm435_vm12, %v419_v27, %v451_v37  ;;  %v420_v44 = vadd.f32 %v2556_v56, %v2546_v46  ;;  %v423_v45 = vadd.f32 %v2556_v56, %v381_v39  ;;  %vm520_vm5 = vcmp.gt.f32.partialorder %v2636_v50, 0.0  ;;  %v2679_v26 = vld [vmem:[#allocation5 + $0x18] sm:$0xff] }
 0x1fd   :  { %v470_v43 = vsel %vm438_vm13, %v422_v28, %v454_v38  ;;  %v2628_v47 = vsel %vm519_vm14, %v467_v42, -1e+30  ;;  %vm523_vm6 = vcmp.gt.f32.partialorder %v2638_v53, 0.0  ;;  %v425_v61 = vadd.f32 %v2556_v56, %v391_v60 }
 0x1fe   :  { %v2632_v48 = vsel %vm522_vm15, %v470_v43, -1e+30  ;;  %v452_v49 = vmul.f32 0.2, %v420_v44  ;;  %v455_v52 = vmul.f32 0.2, %v423_v45  ;;  %v493_v62 = vunpack.c.3.s8 %v2581_v16 }
 0x1ff   :  { %vm436_vm3 = vcmp.ge.f32.partialorder %v420_v44, 0.0  ;;  %vm439_vm4 = vcmp.ge.f32.partialorder %v423_v45, 0.0  ;;  %v457_v63 = vmul.f32 0.2, %v425_v61  ;;  %vm441_vm7 = vcmp.ge.f32.partialorder %v425_v61, 0.0 }
 0x200   :  { %v468_v46 = vsel %vm436_vm3, %v420_v44, %v452_v49  ;;  %v471_v57 = vsel %vm439_vm4, %v423_v45, %v455_v52  ;;  %v2655_v0 = vcvt.s32.f32 %v493_v62  ;;  %v494_v37 = vunpack.c.0.s8 %v2679_v26 }
 0x201   :  { %554 = vmax.xlane.f32.xlu2 %v2602_v30  ;;  %560 = vmax.xlane.f32.xlu1 %v2606_v33  ;;  %v2644_v58 = vsel %vm520_vm5, %v468_v46, -1e+30  ;;  %v2648_v59 = vsel %vm523_vm6, %v471_v57, -1e+30  ;;  %v473_v1 = vsel %vm441_vm7, %v425_v61, %v457_v63  ;;  %v497_v46 = vunpack.c.3.s8 %v2679_v26 }
 0x202   :  { %552 = vmax.xlane.f32.xlu0 %v2616_v36  ;;  %vm3289_vm8 = vcmp.gt.f32.partialorder %v2655_v0, 0.0  ;;  %v2689_v39 = vcvt.s32.f32 %v494_v37  ;;  %v427_v62 = vadd.f32 %v2556_v56, %v401_v4  ;;  %v495_v63 = vunpack.c.1.s8 %v2679_v26 }
 0x203   :  { %v2660_v2 = vsel %vm3289_vm8, %v473_v1, -1e+30 }
 0x204   :  { %vm3285_vm4 = vcmp.gt.f32.partialorder %v2689_v39, 0.0 }
 0x209   :  { %556 = vmax.xlane.f32.xlu2 %v2628_v47  ;;  %562 = vmax.xlane.f32.xlu1 %v2632_v48 }
 0x211   :  { %558 = vmax.xlane.f32.xlu2 %v2644_v58  ;;  %564 = vmax.xlane.f32.xlu1 %v2648_v59 }
 0x22a   :  { %410 = vperm.xlu1 %2065, %v2537_v32   ;;  %v396_v32 = vpop.permute.xlu0 %395 }
 0x22b   :  { %v426_v29 = vadd.f32 %v2556_v56, %v396_v32  ;;  %v459_v32 = vmul.f32 0.2, %v427_v62 }
 0x22d   :  { %v458_v38 = vmul.f32 0.2, %v426_v29  ;;  %vm442_vm3 = vcmp.ge.f32.partialorder %v426_v29, 0.0 }
 0x22f   :  { %v474_v42 = vsel %vm442_vm3, %v426_v29, %v458_v38  ;;  %vm443_vm3 = vcmp.ge.f32.partialorder %v427_v62, 0.0 }
 0x230   :  { %v2696_v45 = vsel %vm3285_vm4, %v474_v42, -1e+30  ;;  %v475_v4 = vsel %vm443_vm3, %v427_v62, %v459_v32 }
 0x254   :  { %568 = vmax.xlane.f32.xlu1 %v2660_v2 }
 0x26c   :  { %v549_v5 = vpop.xlane.xlu1 %548  ;;  %v551_v9 = vpop.xlane.xlu2 %550 }
 0x26d   :  { %v579_v6 = vsub.f32 %v2577_v13, %v549_v5  ;;  %v547_v7 = vpop.xlane.xlu0 %546  ;;  %v580_v18 = vsub.f32 %v2573_v12, %v551_v9  ;;  %v424_v13 = vadd.f32 %v2556_v56, %v386_v3  ;;  %v2715_v5 = vcvt.s32.f32 %v495_v63 }
 0x26e   :  { %v578_v8 = vsub.f32 %v2587_v17, %v547_v7  ;;  %v492_v17 = vunpack.c.2.s8 %v2581_v16 }
 0x26f   :  { %v596_v11 = vmul.f32 1.442695, %v579_v6  ;;  %v598_v19 = vmul.f32 1.442695, %v580_v18  ;;  %v456_v12 = vmul.f32 0.2, %v424_v13 }
 0x270   :  { %v594_v14 = vmul.f32 1.442695, %v578_v8  ;;  %v2677_v25 = vcvt.s32.f32 %v492_v17  ;;  %vm440_vm12 = vcmp.ge.f32.partialorder %v424_v13, 0.0  ;;  %vm527_vm4 = vcmp.gt.f32.partialorder %v2715_v5, 0.0 }
 0x271   :  { %2070 = vpow2.f32 %v596_v11  ;;  %v472_v28 = vsel %vm440_vm12, %v424_v13, %v456_v12  ;;  %v2726_v11 = vsel %vm527_vm4, %v475_v4, -1e+30 }
 0x272   :  { %2072 = vpow2.f32 %v594_v14  ;;  %vm524_vm13 = vcmp.gt.f32.partialorder %v2677_v25, 0.0 }
 0x273   :  { %2074 = vpow2.f32 %v598_v19  ;;  %v2686_v16 = vsel %vm524_vm13, %v472_v28, -1e+30 }
 0x274   :  { %v561_v24 = vpop.xlane.xlu1 %560  ;;  %v555_v27 = vpop.xlane.xlu2 %554 }
 0x275   :  { %v582_v40 = vsub.f32 %v2602_v30, %v555_v27  ;;  %v585_v6 = vsub.f32 %v2606_v33, %v561_v24  ;;  %v553_v9 = vpop.xlane.xlu0 %552 }
 0x276   :  { %v581_v14 = vsub.f32 %v2616_v36, %v553_v9 }
 0x277   :  { %v2666_v20 = vpop.eup %2070  ;;  %v602_v43 = vmul.f32 1.442695, %v582_v40  ;;  %v608_v8 = vmul.f32 1.442695, %v585_v6 }
 0x278   :  { %v2668_v22 = vpop.eup %2072  ;;  %628 = vadd.xlane.f32.xlu2 %v2666_v20  ;;  %v600_v18 = vmul.f32 1.442695, %v581_v14 }
 0x279   :  { %626 = vadd.xlane.f32.xlu0 %v2668_v22  ;;  %v2674_v23 = vpop.eup %2074  ;;  %2076 = vpow2.f32 %v602_v43 }
 0x27c   :  { %v563_v41 = vpop.xlane.xlu1 %562  ;;  %v557_v44 = vpop.xlane.xlu2 %556 }
 0x27d   :  { %v583_v49 = vsub.f32 %v2628_v47, %v557_v44  ;;  %v586_v33 = vsub.f32 %v2632_v48, %v563_v41 }
 0x27f   :  { %v604_v30 = vmul.f32 1.442695, %v583_v49  ;;  %v2703_v57 = vpop.eup %2076  ;;  %v610_v19 = vmul.f32 1.442695, %v586_v33 }
 0x280   :  { %630 = vadd.xlane.f32.xlu2 %v2674_v23 }
 0x281   :  { %2078 = vpow2.f32 %v604_v30 }
 0x282   :  { %2080 = vpow2.f32 %v608_v8 }
 0x283   :  { %2082 = vpow2.f32 %v600_v18 }
 0x284   :  { %v2700_v52 = vpop.xlane.xlu1 %564  ;;  %v559_v13 = vpop.xlane.xlu2 %558  ;;  %2084 = vpow2.f32 %v610_v19 }
 0x285   :  { %v584_v24 = vsub.f32 %v2644_v58, %v559_v13 }
 0x287   :  { %v2712_v1 = vpop.eup %2078  ;;  %v606_v12 = vmul.f32 1.442695, %v584_v24 }
 0x288   :  { %566 = vmax.xlane.f32.xlu2 %v2686_v16  ;;  %v2731_v17 = vpop.eup %2080 }
 0x289   :  { %v2735_v27 = vpop.eup %2082  ;;  %2086 = vpow2.f32 %v606_v12 }
 0x28a   :  { %v2737_v36 = vpop.eup %2084 }
 0x28d   :  { %405 = vperm.xlu0 %2064, %v2535_v31   ;;  %v2706_v31 = vcvt.s32.f32 %v497_v46 }
 0x28f   :  { %vm3286_vm12 = vcmp.gt.f32.partialorder %v2706_v31, 0.0  ;;  %v2741_v48 = vpop.eup %2086 }
 0x290   :  { %570 = vmax.xlane.f32.xlu2 %v2696_v45 }
 0x298   :  { %634 = vadd.xlane.f32.xlu2 %v2703_v57 }
 0x29c   :  { %v411_v60 = vpop.permute.xlu1 %410 }
 0x29d   :  { %v429_v61 = vadd.f32 %v2556_v56, %v411_v60  ;;  %v496_v60 = vunpack.c.2.s8 %v2679_v26 }
 0x29f   :  { %v461_v47 = vmul.f32 0.2, %v429_v61  ;;  %vm445_vm7 = vcmp.ge.f32.partialorder %v429_v61, 0.0 }
 0x2a0   :  { %636 = vadd.xlane.f32.xlu2 %v2712_v1 }
 0x2a1   :  { %v477_v3 = vsel %vm445_vm7, %v429_v61, %v461_v47  ;;  %v2752_v47 = vcvt.s32.f32 %v496_v60 }
 0x2a2   :  { %v2720_v7 = vsel %vm3286_vm12, %v477_v3, -1e+30  ;;  %v587_v3 = vsub.f32 %v2648_v59, %v2700_v52 }
 0x2a3   :  { %576 = vmax.xlane.f32.xlu1 %v2720_v7  ;;  %vm3287_vm3 = vcmp.gt.f32.partialorder %v2752_v47, 0.0 }
 0x2a8   :  { %572 = vmax.xlane.f32.xlu2 %v2726_v11 }
 0x2b0   :  { %640 = vadd.xlane.f32.xlu2 %v2731_v17 }
 0x2b7   :  { %632 = vadd.xlane.f32.xlu0 %v2735_v27 }
 0x2b8   :  { %642 = vadd.xlane.f32.xlu2 %v2737_v36 }
 0x2bf   :  { %638 = vadd.xlane.f32.xlu0 %v2741_v48 }
 0x2c7   :  { %v569_v28 = vpop.xlane.xlu1 %568 }
 0x2c8   :  { %v589_v58 = vsub.f32 %v2660_v2, %v569_v28 }
 0x2ca   :  { %v616_v29 = vmul.f32 1.442695, %v589_v58 }
 0x2cc   :  { %2088 = vpow2.f32 %v616_v29 }
 0x2d2   :  { %v2745_v37 = vpop.eup %2088 }
 0x2d3   :  { %648 = vadd.xlane.f32.xlu2 %v2745_v37 }
 0x2eb   :  { %v629_v38 = vpop.xlane.xlu2 %628 }
 0x2ec   :  { %v659_v40 = vmax.f32 %v629_v38, 1e-30  ;;  %v627_v41 = vpop.xlane.xlu0 %626 }
 0x2ed   :  { %v658_v42 = vmax.f32 %v627_v41, 1e-30 }
 0x2ee   :  { %2090 = vrcp.f32 %v659_v40 }
 0x2ef   :  { %2092 = vrcp.f32 %v658_v42 }
 0x2f3   :  { %v631_v43 = vpop.xlane.xlu2 %630 }
 0x2f4   :  { %v2091_v44 = vpop.eup %2090  ;;  %v660_v29 = vmax.f32 %v631_v43, 1e-30  ;;  %v2042_v43 = vld [vmem:[#allocation10 + $0x30] sm:$0xff] }
 0x2f5   :  { %v2093_v49 = vpop.eup %2092  ;;  %v691_v30 = vmul.f32 %v2091_v44, %v2666_v20 }
 0x2f6   :  { %v690_v46 = vmul.f32 %v2093_v49, %v2668_v22  ;;  %v612_v22 = vmul.f32 1.442695, %v587_v3 }
 0x2f8   :  { %v706_v2 = vpack.c.bf16 %v691_v30, %v690_v46  ;;  %v2043_v46 = vld [vmem:[#allocation10 + $0x38] sm:$0xff] }
 0x2f9   :  { %855 = vmatpush.bf16.msra.mxu3 %v2043_v46 }
 0x2fa   :  { %726 = vmatmul.bf16.vlgmr.msra.gmra.mxu2 %v706_v2  ;;  %v2041_v2 = vld [vmem:[#allocation10 + $0x28] sm:$0xff] }
 0x2fb   :  { %v567_v61 = vpop.xlane.xlu2 %566 }
 0x2fc   :  { %v588_v62 = vsub.f32 %v2686_v16, %v567_v61 }
 0x2fd   :  { %856 = vmatpush.bf16.msra.mxu3 %v2042_v43 }
 0x2fe   :  { %v614_v63 = vmul.f32 1.442695, %v588_v62 }
 0x2ff   :  { %v406_v32 = vpop.permute.xlu0 %405 }
 0x300   :  { %2094 = vpow2.f32 %v614_v63  ;;  %v428_v6 = vadd.f32 %v2556_v56, %v406_v32 }
 0x301   :  { %2096 = vpow2.f32 %v612_v22  ;;  %857 = vmatpush.bf16.msra.mxu3 %v2041_v2 }
 0x302   :  { %v460_v20 = vmul.f32 0.2, %v428_v6  ;;  %vm444_vm7 = vcmp.ge.f32.partialorder %v428_v6, 0.0 }
 0x303   :  { %v571_v4 = vpop.xlane.xlu2 %570 }
 0x304   :  { %v476_v26 = vsel %vm444_vm7, %v428_v6, %v460_v20  ;;  %v590_v59 = vsub.f32 %v2696_v45, %v571_v4 }
 0x305   :  { %v2760_v16 = vsel %vm3287_vm3, %v476_v26, -1e+30 }
 0x306   :  { %v2762_v8 = vpop.eup %2094  ;;  %574 = vmax.xlane.f32.xlu0 %v2760_v16  ;;  %v618_v56 = vmul.f32 1.442695, %v590_v59 }
 0x307   :  { %646 = vadd.xlane.f32.xlu1 %v2762_v8  ;;  %v2767_v9 = vpop.eup %2096 }
 0x308   :  { %2098 = vpow2.f32 %v618_v56 }
 0x30b   :  { %v635_v52 = vpop.xlane.xlu2 %634 }
 0x30c   :  { %v662_v30 = vmax.f32 %v635_v52, 1e-30  ;;  %v2038_v52 = vld [vmem:[#allocation10 + $0x10] sm:$0xff] }
 0x30e   :  { %644 = vadd.xlane.f32.xlu0 %v2767_v9  ;;  %v2770_v33 = vpop.eup %2098 }
 0x313   :  { %v637_v14 = vpop.xlane.xlu2 %636 }
 0x314   :  { %v663_v44 = vmax.f32 %v637_v14, 1e-30  ;;  %v2036_v14 = vld [vmem:[#allocation10] sm:$0xff] }
 0x316   :  { %v577_v18 = vpop.xlane.xlu1 %576  ;;  %650 = vadd.xlane.f32.xlu0 %v2770_v33 }
 0x317   :  { %v593_v19 = vsub.f32 %v2720_v7, %v577_v18 }
 0x319   :  { %v624_v13 = vmul.f32 1.442695, %v593_v19 }
 0x31b   :  { %2100 = vpow2.f32 %v624_v13  ;;  %v573_v45 = vpop.xlane.xlu2 %572 }
 0x31c   :  { %v591_v24 = vsub.f32 %v2726_v11, %v573_v45 }
 0x31e   :  { %v620_v12 = vmul.f32 1.442695, %v591_v24 }
 0x320   :  { %2102 = vpow2.f32 %v620_v12 }
 0x321   :  { %v2775_v28 = vpop.eup %2100  ;;  %2104 = vrcp.f32 %v660_v29 }
 0x322   :  { %656 = vadd.xlane.f32.xlu0 %v2775_v28 }
 0x323   :  { %v641_v3 = vpop.xlane.xlu2 %640 }
 0x324   :  { %v665_v20 = vmax.f32 %v641_v3, 1e-30 }
 0x326   :  { %v2778_v58 = vpop.eup %2102 }
 0x327   :  { %652 = vadd.xlane.f32.xlu1 %v2778_v58  ;;  %v2105_v7 = vpop.eup %2104 }
 0x328   :  { %v692_v42 = vmul.f32 %v2105_v7, %v2674_v23  ;;  %v2040_v23 = vld [vmem:[#allocation10 + $0x20] sm:$0xff] }
 0x329   :  { %858 = vmatpush.bf16.msra.mxu3 %v2040_v23 }
 0x32a   :  { %v633_v38 = vpop.xlane.xlu0 %632 }
 0x32b   :  { %v661_v40 = vmax.f32 %v633_v38, 1e-30  ;;  %v643_v13 = vpop.xlane.xlu2 %642 }
 0x32c   :  { %v666_v12 = vmax.f32 %v643_v13, 1e-30 }
 0x32d   :  { %2106 = vrcp.f32 %v661_v40 }
 0x32e   :  { %2108 = vrcp.f32 %v663_v44 }
 0x32f   :  { %2110 = vrcp.f32 %v662_v30 }
 0x332   :  { %v639_v62 = vpop.xlane.xlu0 %638 }
 0x333   :  { %v2107_v41 = vpop.eup %2106  ;;  %v664_v32 = vmax.f32 %v639_v62, 1e-30 }
 0x334   :  { %v693_v11 = vmul.f32 %v2107_v41, %v2735_v27  ;;  %v2109_v60 = vpop.eup %2108 }
 0x335   :  { %v2111_v61 = vpop.eup %2110  ;;  %v695_v63 = vmul.f32 %v2109_v60, %v2712_v1  ;;  %2112 = vrcp.f32 %v664_v32  ;;  %v2039_v1 = vld [vmem:[#allocation10 + $0x18] sm:$0xff] }
 0x336   :  { %v707_v49 = vpack.c.bf16 %v693_v11, %v692_v42  ;;  %v694_v27 = vmul.f32 %v2111_v61, %v2703_v57  ;;  %2114 = vrcp.f32 %v665_v20  ;;  %859 = vmatpush.bf16.msra.mxu3 %v2039_v1  ;;  %v2037_v57 = vld [vmem:[#allocation10 + $0x8] sm:$0xff] }
 0x338   :  { %731 = vmatmul.bf16.gmra.mxu2 %v707_v49  ;;  %v708_v6 = vpack.c.bf16 %v695_v63, %v694_v27 }
 0x33a   :  { %860 = vmatpush.bf16.msra.mxu3 %v2038_v52 }
 0x33b   :  { %v2113_v22 = vpop.eup %2112 }
 0x33c   :  { %v2115_v4 = vpop.eup %2114  ;;  %v696_v26 = vmul.f32 %v2113_v22, %v2741_v48 }
 0x33d   :  { %v697_v59 = vmul.f32 %v2115_v4, %v2731_v17  ;;  %v2791_v17 = vld [vmem:[%s3277_s5] ss:$0 sm:$0xff] }
 0x33e   :  { %861 = vmatpush.bf16.msra.mxu3 %v2037_v57 }
 0x33f   :  { %v709_v56 = vpack.c.bf16 %v697_v59, %v696_v26 }
 0x342   :  { %862 = vmatpush.bf16.msra.mxu3 %v2036_v14 }
 0x346   :  { %v649_v46 = vpop.xlane.xlu2 %648 }
 0x347   :  { %v669_v62 = vmax.f32 %v649_v46, 1e-30 }
 0x348   :  { %736 = vmatmul.bf16.gmra.mxu2 %v708_v6 }
 0x358   :  { %741 = vmatmul.bf16.gmra.mxu2 %v709_v56 }
 0x379   :  { %v575_v18 = vpop.xlane.xlu0 %574 }
 0x37a   :  { %v592_v19 = vsub.f32 %v2760_v16, %v575_v18  ;;  %v647_v44 = vpop.xlane.xlu1 %646 }
 0x37b   :  { %v668_v60 = vmax.f32 %v647_v44, 1e-30 }
 0x37c   :  { %v622_v45 = vmul.f32 1.442695, %v592_v19 }
 0x37d   :  { %v727_v24 = vpop.f32.mrf.mxu2 }
 0x37e   :  { %2116 = vpow2.f32 %v622_v45  ;;  %v728_v40 = vadd.f32 %v2791_v17, %v727_v24 }
 0x37f   :  { %2118 = vrcp.f32 %v666_v12 }
 0x380   :  { %v767_v42 = vmax.f32 %v728_v40, 0.0 }
 0x381   :  { %v645_v48 = vpop.xlane.xlu0 %644 }
 0x382   :  { %v667_v29 = vmax.f32 %v645_v48, 1e-30 }
 0x384   :  { %v2793_v38 = vpop.eup %2116  ;;  %2120 = vrcp.f32 %v667_v29 }
 0x385   :  { %v729_v7 = vpop.f32.mrf.mxu2  ;;  %654 = vadd.xlane.f32.xlu2 %v2793_v38  ;;  %v2119_v41 = vpop.eup %2118  ;;  %2122 = vrcp.f32 %v668_v60 }
 0x386   :  { %v730_v16 = vadd.f32 %v2791_v17, %v729_v7  ;;  %v698_v43 = vmul.f32 %v2119_v41, %v2737_v36  ;;  %2124 = vrcp.f32 %v669_v62 }
 0x388   :  { %v768_v11 = vmax.f32 %v730_v16, 0.0 }
 0x389   :  { %v651_v32 = vpop.xlane.xlu0 %650 }
 0x38a   :  { %v2121_v49 = vpop.eup %2120  ;;  %v783_v30 = vpack.c.bf16 %v768_v11, %v767_v42  ;;  %v670_v36 = vmax.f32 %v651_v32, 1e-30 }
 0x38b   :  { %v699_v2 = vmul.f32 %v2121_v49, %v2767_v9  ;;  %v2123_v63 = vpop.eup %2122 }
 0x38c   :  { %863 = vmatmul.bf16.vlgmr.msra.gmra.mxu3 %v783_v30  ;;  %v2125_v23 = vpop.eup %2124  ;;  %v700_v3 = vmul.f32 %v2123_v63, %v2762_v8 }
 0x38d   :  { %v710_v61 = vpack.c.bf16 %v699_v2, %v698_v43  ;;  %v701_v6 = vmul.f32 %v2125_v23, %v2745_v37 }
 0x38f   :  { %746 = vmatmul.bf16.gmra.mxu2 %v710_v61  ;;  %v711_v22 = vpack.c.bf16 %v701_v6, %v700_v3 }
 0x395   :  { %v657_v11 = vpop.xlane.xlu0 %656 }
 0x396   :  { %v673_v44 = vmax.f32 %v657_v11, 1e-30 }
 0x39a   :  { %v653_v27 = vpop.xlane.xlu1 %652 }
 0x39b   :  { %v671_v20 = vmax.f32 %v653_v27, 1e-30 }
 0x39d   :  { %2126 = vrcp.f32 %v671_v20 }
 0x39e   :  { %2128 = vrcp.f32 %v670_v36 }
 0x39f   :  { %751 = vmatmul.bf16.gmra.mxu2 %v711_v22  ;;  %2130 = vrcp.f32 %v673_v44 }
 0x3a3   :  { %v2127_v9 = vpop.eup %2126 }
 0x3a4   :  { %v2129_v4 = vpop.eup %2128  ;;  %v703_v26 = vmul.f32 %v2127_v9, %v2778_v58 }
 0x3a5   :  { %v702_v59 = vmul.f32 %v2129_v4, %v2770_v33  ;;  %v2131_v46 = vpop.eup %2130 }
 0x3a6   :  { %v705_v60 = vmul.f32 %v2131_v46, %v2775_v28 }
 0x3a7   :  { %v712_v56 = vpack.c.bf16 %v703_v26, %v702_v59 }
 0x3af   :  { %756 = vmatmul.bf16.gmra.mxu2 %v712_v56 }
 0x3bb   :  { %v732_v1 = vpop.f32.mrf.mxu2 }
 0x3bc   :  { %v733_v8 = vadd.f32 %v2791_v17, %v732_v1 }
 0x3be   :  { %v769_v57 = vmax.f32 %v733_v8, 0.0 }
 0x3c3   :  { %v734_v52 = vpop.f32.mrf.mxu2 }
 0x3c4   :  { %v735_v37 = vadd.f32 %v2791_v17, %v734_v52 }
 0x3c6   :  { %v770_v14 = vmax.f32 %v735_v37, 0.0 }
 0x3c8   :  { %v784_v18 = vpack.c.bf16 %v770_v14, %v769_v57 }
 0x3ca   :  { %868 = vmatmul.bf16.gmra.mxu3 %v784_v18 }
 0x3cb   :  { %v737_v19 = vpop.f32.mrf.mxu2 }
 0x3cc   :  { %v738_v13 = vadd.f32 %v2791_v17, %v737_v19 }
 0x3ce   :  { %v771_v24 = vmax.f32 %v738_v13, 0.0 }
 0x3d3   :  { %v739_v45 = vpop.f32.mrf.mxu2 }
 0x3d4   :  { %v740_v58 = vadd.f32 %v2791_v17, %v739_v45 }
 0x3d6   :  { %v772_v33 = vmax.f32 %v740_v58, 0.0 }
 0x3d8   :  { %v785_v12 = vpack.c.bf16 %v772_v33, %v771_v24 }
 0x3da   :  { %873 = vmatmul.bf16.gmra.mxu3 %v785_v12 }
 0x3db   :  { %v742_v48 = vpop.f32.mrf.mxu2 }
 0x3dc   :  { %v743_v29 = vadd.f32 %v2791_v17, %v742_v48 }
 0x3de   :  { %v773_v16 = vmax.f32 %v743_v29, 0.0 }
 0x3e3   :  { %v744_v40 = vpop.f32.mrf.mxu2 }
 0x3e4   :  { %v745_v7 = vadd.f32 %v2791_v17, %v744_v40 }
 0x3e6   :  { %v774_v41 = vmax.f32 %v745_v7, 0.0 }
 0x3e8   :  { %v786_v42 = vpack.c.bf16 %v774_v41, %v773_v16 }
 0x3ea   :  { %878 = vmatmul.bf16.gmra.mxu3 %v786_v42 }
 0x3f8   :  { %v655_v49 = vpop.xlane.xlu2 %654 }
 0x3f9   :  { %v672_v30 = vmax.f32 %v655_v49, 1e-30 }
 0x3fb   :  { %2132 = vrcp.f32 %v672_v30 }
 0x401   :  { %v2133_v43 = vpop.eup %2132 }
 0x402   :  { %v704_v2 = vmul.f32 %v2133_v43, %v2793_v38 }
 0x404   :  { %v713_v61 = vpack.c.bf16 %v705_v60, %v704_v2 }
 0x406   :  { %761 = vmatmul.bf16.gmra.mxu2 %v713_v61 }
 0x40f   :  { %v2812_v62 = vpop.f32.mrf.mxu3 }
 0x410   :  { %928 = vperm.xlu1 %2065, %v2812_v62  }
 0x412   :  { %v747_v63 = vpop.f32.mrf.mxu2 }
 0x413   :  { %v748_v3 = vadd.f32 %v2791_v17, %v747_v63 }
 0x415   :  { %v775_v6 = vmax.f32 %v748_v3, 0.0 }
 0x417   :  { %v2815_v23 = vpop.f32.mrf.mxu3 }
 0x418   :  { %933 = vperm.xlu2 %2066, %v2815_v23  }
 0x41a   :  { %v749_v27 = vpop.f32.mrf.mxu2 }
 0x41b   :  { %v750_v32 = vadd.f32 %v2791_v17, %v749_v27 }
 0x41d   :  { %v776_v38 = vmax.f32 %v750_v32, 0.0  ;;  %v904_v32 = vpack.c.bf16 %v2815_v23, %v2812_v62 }
 0x41f   :  { %v787_v20 = vpack.c.bf16 %v776_v38, %v775_v6  ;;  %v912_v6 = vld [vmem:[%s3279_s7] sm:$0x1] }
 0x421   :  { %883 = vmatmul.bf16.gmra.mxu3 %v787_v20 }
 0x422   :  { %v752_v28 = vpop.f32.mrf.mxu2 }
 0x423   :  { %v753_v22 = vadd.f32 %v2791_v17, %v752_v28 }
 0x425   :  { %v777_v4 = vmax.f32 %v753_v22, 0.0 }
 0x42a   :  { %v754_v36 = vpop.f32.mrf.mxu2 }
 0x42b   :  { %v755_v9 = vadd.f32 %v2791_v17, %v754_v36 }
 0x42d   :  { %v778_v26 = vmax.f32 %v755_v9, 0.0 }
 0x42f   :  { %v788_v59 = vpack.c.bf16 %v778_v26, %v777_v4 }
 0x431   :  { %888 = vmatmul.bf16.gmra.mxu3 %v788_v59 }
 0x432   :  { %v757_v56 = vpop.f32.mrf.mxu2 }
 0x433   :  { %v758_v1 = vadd.f32 %v2791_v17, %v757_v56 }
 0x435   :  { %v779_v37 = vmax.f32 %v758_v1, 0.0 }
 0x43a   :  { %v759_v8 = vpop.f32.mrf.mxu2 }
 0x43b   :  { %v760_v52 = vadd.f32 %v2791_v17, %v759_v8 }
 0x43d   :  { %v780_v57 = vmax.f32 %v760_v52, 0.0 }
 0x43f   :  { %v789_v14 = vpack.c.bf16 %v780_v57, %v779_v37 }
 0x441   :  { %893 = vmatmul.bf16.gmra.mxu3 %v789_v14 }
 0x44d   :  { %v869_v18 = vpop.f32.mrf.mxu3 }
 0x44e   :  { %938 = vperm.xlu0 %2064, %v869_v18  }
 0x455   :  { %v871_v19 = vpop.f32.mrf.mxu3 }
 0x456   :  { %943 = vperm.xlu1 %2065, %v871_v19   ;;  %v905_v27 = vpack.c.bf16 %v871_v19, %v869_v18 }
 0x45d   :  { %v874_v13 = vpop.f32.mrf.mxu3 }
 0x45e   :  { %948 = vperm.xlu0 %2064, %v874_v13  }
 0x465   :  { %v876_v45 = vpop.f32.mrf.mxu3 }
 0x466   :  { %953 = vperm.xlu2 %2066, %v876_v45   ;;  %v906_v3 = vpack.c.bf16 %v876_v45, %v874_v13 }
 0x46d   :  { %v879_v58 = vpop.f32.mrf.mxu3 }
 0x46e   :  { %958 = vperm.xlu2 %2066, %v879_v58  }
 0x472   :  { %v934_v38 = vpop.permute.xlu2 %933 }
 0x475   :  { %v881_v24 = vpop.f32.mrf.mxu3 }
 0x476   :  { %963 = vperm.xlu2 %2066, %v881_v24   ;;  %v907_v63 = vpack.c.bf16 %v881_v24, %v879_v58 }
 0x482   :  { %v929_v22 = vpop.permute.xlu1 %928 }
 0x489   :  { %v762_v33 = vpop.f32.mrf.mxu2 }
 0x48a   :  { %v763_v12 = vadd.f32 %v2791_v17, %v762_v33 }
 0x48c   :  { %v781_v40 = vmax.f32 %v763_v12, 0.0 }
 0x491   :  { %v764_v48 = vpop.f32.mrf.mxu2 }
 0x492   :  { %v765_v29 = vadd.f32 %v2791_v17, %v764_v48 }
 0x494   :  { %v782_v7 = vmax.f32 %v765_v29, 0.0 }
 0x496   :  { %v790_v16 = vpack.c.bf16 %v782_v7, %v781_v40 }
 0x498   :  { %898 = vmatmul.bf16.gmra.mxu3 %v790_v16 }
 0x4a4   :  { %v884_v41 = vpop.f32.mrf.mxu3 }
 0x4a5   :  { %968 = vperm.xlu0 %2064, %v884_v41  }
 0x4ac   :  { %v886_v42 = vpop.f32.mrf.mxu3 }
 0x4ad   :  { %973 = vperm.xlu1 %2065, %v886_v42   ;;  %v908_v11 = vpack.c.bf16 %v886_v42, %v884_v41 }
 0x4b4   :  { %v889_v44 = vpop.f32.mrf.mxu3 }
 0x4b5   :  { %978 = vperm.xlu2 %2066, %v889_v44  }
 0x4bc   :  { %v891_v49 = vpop.f32.mrf.mxu3 }
 0x4bd   :  { %983 = vperm.xlu1 %2065, %v891_v49   ;;  %v909_v30 = vpack.c.bf16 %v891_v49, %v889_v44 }
 0x4c0   :  { %v954_v20 = vpop.permute.xlu2 %953  ;;  %v939_v28 = vpop.permute.xlu0 %938 }
 0x4c4   :  { %v894_v46 = vpop.f32.mrf.mxu3 }
 0x4c5   :  { %988 = vperm.xlu0 %2064, %v894_v46  }
 0x4c8   :  { %v959_v4 = vpop.permute.xlu2 %958  ;;  %v944_v8 = vpop.permute.xlu1 %943 }
 0x4cc   :  { %v2826_v43 = vpop.f32.mrf.mxu3 }
 0x4cd   :  { %v910_v61 = vpack.c.bf16 %v2826_v43, %v894_v46 }
 0x4d0   :  { %v949_v26 = vpop.permute.xlu0 %948  ;;  %v964_v40 = vpop.permute.xlu2 %963 }
 0x51b   :  { %v2828_v2 = vpop.f32.mrf.mxu3 }
 0x523   :  { %v2830_v17 = vpop.f32.mrf.mxu3 }
 0x524   :  { %v911_v60 = vpack.c.bf16 %v2830_v17, %v2828_v2 }
 0x526   :  { %913 = vmatpush.bf16.xpose.msrb.mxu1 %v911_v60  ;;  %1259 = vmatpush.bf16.msrb.mxu0 %v911_v60 }
 0x52a   :  { %1260 = vmatpush.bf16.msrb.mxu0 %v910_v61 }
 0x52e   :  { %914 = vmatpush.bf16.xpose.msrb.mxu1 %v910_v61  ;;  %1261 = vmatpush.bf16.msrb.mxu0 %v909_v30  ;;  %v974_v61 = vpop.permute.xlu1 %973 }
 0x532   :  { %1262 = vmatpush.bf16.msrb.mxu0 %v908_v11 }
 0x536   :  { %915 = vmatpush.bf16.xpose.msrb.mxu1 %v909_v30  ;;  %1263 = vmatpush.bf16.msrb.mxu0 %v907_v63 }
 0x53a   :  { %1264 = vmatpush.bf16.msrb.mxu0 %v906_v3 }
 0x53e   :  { %916 = vmatpush.bf16.xpose.msrb.mxu1 %v908_v11  ;;  %1265 = vmatpush.bf16.msrb.mxu0 %v905_v27 }
 0x542   :  { %1266 = vmatpush.bf16.msrb.mxu0 %v904_v32 }
 0x546   :  { %917 = vmatpush.bf16.xpose.msrb.mxu1 %v907_v63 }
 0x54e   :  { %918 = vmatpush.bf16.xpose.msrb.mxu1 %v906_v3 }
 0x556   :  { %919 = vmatpush.bf16.xpose.msrb.mxu1 %v905_v27 }
 0x55e   :  { %920 = vmatpush.bf16.xpose.msrb.mxu1 %v904_v32 }
 0x565   :  { %921 = vmatmul.bf16.vlgmr.msrb.gmra.mxu1 %v912_v6 }
 0x5e2   :  { %v922_v36 = vpop.f32.mrf.mxu1 }
 0x5e3   :  { %v2840_v9 = vperm.slane %v922_v36, 0 }
 0x5e5   :  { %v1009_v62 = vadd.f32 %v2840_v9, %v939_v28  ;;  %v1008_v23 = vadd.f32 %v2840_v9, %v934_v38  ;;  %v1007_v59 = vadd.f32 %v2840_v9, %v929_v22  ;;  %v1011_v56 = vadd.f32 %v2840_v9, %v949_v26  ;;  %v969_v22 = vpop.permute.xlu0 %968  ;;  %v979_v26 = vpop.permute.xlu2 %978 }
 0x5e6   :  { %v1012_v1 = vadd.f32 %v2840_v9, %v954_v20  ;;  %v1010_v14 = vadd.f32 %v2840_v9, %v944_v8  ;;  %v1014_v41 = vadd.f32 %v2840_v9, %v964_v40  ;;  %v1013_v11 = vadd.f32 %v2840_v9, %v959_v4 }
 0x5e7   :  { %vm1025_vm7 = vcmp.ge.f32.partialorder %v1009_v62, 0.0  ;;  %v1041_v52 = vmul.f32 0.2, %v1009_v62  ;;  %vm1024_vm12 = vcmp.ge.f32.partialorder %v1008_v23, 0.0  ;;  %v1040_v37 = vmul.f32 0.2, %v1008_v23 }
 0x5e8   :  { %vm1023_vm3 = vcmp.ge.f32.partialorder %v1007_v59, 0.0  ;;  %v1039_v57 = vmul.f32 0.2, %v1007_v59  ;;  %v1043_v12 = vmul.f32 0.2, %v1011_v56  ;;  %v1016_v27 = vadd.f32 %v2840_v9, %v974_v61 }
 0x5e9   :  { %v1057_v18 = vsel %vm1025_vm7, %v1009_v62, %v1041_v52  ;;  %v1056_v19 = vsel %vm1024_vm12, %v1008_v23, %v1040_v37  ;;  %v1044_v48 = vmul.f32 0.2, %v1012_v1  ;;  %vm1027_vm12 = vcmp.ge.f32.partialorder %v1011_v56, 0.0 }
 0x5ea   :  { %v924_v13 = vpop.f32.mrf.mxu1  ;;  %v2850_v45 = vsel %vm3288_vm0, %v1057_v18, -1e+30  ;;  %v2854_v58 = vsel %vm515_vm1, %v1056_v19, -1e+30  ;;  %v1055_v24 = vsel %vm1023_vm3, %v1007_v59, %v1039_v57  ;;  %vm1028_vm7 = vcmp.ge.f32.partialorder %v1012_v1, 0.0 }
 0x5eb   :  { %1091 = vmax.xlane.f32.xlu2 %v2850_v45  ;;  %1089 = vmax.xlane.f32.xlu0 %v2854_v58  ;;  %v2860_v33 = vsel %vm514_vm2, %v1055_v24, -1e+30  ;;  %v1042_v29 = vmul.f32 0.2, %v1010_v14  ;;  %vm1026_vm0 = vcmp.ge.f32.partialorder %v1010_v14, 0.0  ;;  %v1059_v7 = vsel %vm1027_vm12, %v1011_v56, %v1043_v12 }
 0x5ec   :  { %1087 = vmax.xlane.f32.xlu1 %v2860_v33  ;;  %v1060_v16 = vsel %vm1028_vm7, %v1012_v1, %v1044_v48  ;;  %v1075_v44 = vsel %vm518_vm9, %v1059_v7, -1e+30  ;;  %v1046_v46 = vmul.f32 0.2, %v1014_v41  ;;  %v1045_v60 = vmul.f32 0.2, %v1013_v11  ;;  %v984_v1 = vpop.permute.xlu1 %983 }
 0x5ed   :  { %v1058_v42 = vsel %vm1026_vm0, %v1010_v14, %v1042_v29  ;;  %v2869_v49 = vsel %vm519_vm14, %v1060_v16, -1e+30  ;;  %vm1030_vm0 = vcmp.ge.f32.partialorder %v1014_v41, 0.0  ;;  %vm1029_vm3 = vcmp.ge.f32.partialorder %v1013_v11, 0.0  ;;  %v989_v18 = vpop.permute.xlu0 %988 }
 0x5ee   :  { %v2874_v30 = vsel %vm517_vm11, %v1058_v42, -1e+30  ;;  %v1062_v63 = vsel %vm1030_vm0, %v1014_v41, %v1046_v46  ;;  %v1061_v3 = vsel %vm1029_vm3, %v1013_v11, %v1045_v60  ;;  %v1048_v38 = vmul.f32 0.2, %v1016_v27 }
 0x5ef   :  { %v2880_v32 = vsel %vm521_vm10, %v1062_v63, -1e+30  ;;  %v2885_v6 = vsel %vm520_vm5, %v1061_v3, -1e+30  ;;  %vm1032_vm12 = vcmp.ge.f32.partialorder %v1016_v27, 0.0  ;;  %v1015_v36 = vadd.f32 %v2840_v9, %v969_v22 }
 0x5f0   :  { %v1064_v20 = vsel %vm1032_vm12, %v1016_v27, %v1048_v38  ;;  %v1017_v23 = vadd.f32 %v2840_v9, %v979_v26 }
 0x5f1   :  { %v2890_v28 = vsel %vm523_vm6, %v1064_v20, -1e+30  ;;  %v1047_v4 = vmul.f32 0.2, %v1015_v36  ;;  %vm1031_vm7 = vcmp.ge.f32.partialorder %v1015_v36, 0.0 }
 0x5f2   :  { %v1049_v56 = vmul.f32 0.2, %v1017_v23  ;;  %vm1033_vm0 = vcmp.ge.f32.partialorder %v1017_v23, 0.0 }
 0x5f3   :  { %1095 = vmax.xlane.f32.xlu2 %v1075_v44  ;;  %1097 = vmax.xlane.f32.xlu0 %v2869_v49  ;;  %v1063_v62 = vsel %vm1031_vm7, %v1015_v36, %v1047_v4 }
 0x5f4   :  { %1093 = vmax.xlane.f32.xlu1 %v2874_v30  ;;  %v2898_v59 = vsel %vm522_vm15, %v1063_v62, -1e+30  ;;  %v1065_v8 = vsel %vm1033_vm0, %v1017_v23, %v1049_v56  ;;  %v1019_v56 = vadd.f32 %v2840_v9, %v989_v18  ;;  %vm3290_vm0 = vcmp.gt.f32.partialorder %v2689_v39, 0.0 }
 0x5f5   :  { %v2904_v52 = vsel %vm524_vm13, %v1065_v8, -1e+30 }
 0x5f6   :  { %vm1035_vm7 = vcmp.ge.f32.partialorder %v1019_v56, 0.0 }
 0x5fb   :  { %1101 = vmax.xlane.f32.xlu2 %v2880_v32 }
 0x5fc   :  { %1099 = vmax.xlane.f32.xlu1 %v2885_v6 }
 0x604   :  { %1105 = vmax.xlane.f32.xlu1 %v2890_v28 }
 0x607   :  { %993 = vperm.xlu0 %2064, %v2826_v43   ;;  %v1018_v43 = vadd.f32 %v2840_v9, %v984_v1 }
 0x609   :  { %v1050_v37 = vmul.f32 0.2, %v1018_v43  ;;  %vm1034_vm3 = vcmp.ge.f32.partialorder %v1018_v43, 0.0 }
 0x60b   :  { %v1066_v57 = vsel %vm1034_vm3, %v1018_v43, %v1050_v37 }
 0x60c   :  { %v2909_v14 = vsel %vm3289_vm8, %v1066_v57, -1e+30 }
 0x631   :  { %1103 = vmax.xlane.f32.xlu0 %v2898_v59 }
 0x639   :  { %1107 = vmax.xlane.f32.xlu0 %v2904_v52 }
 0x641   :  { %1109 = vmax.xlane.f32.xlu0 %v2909_v14 }
 0x65e   :  { %v1092_v19 = vpop.xlane.xlu2 %1091  ;;  %v1090_v13 = vpop.xlane.xlu0 %1089 }
 0x65f   :  { %v1120_v24 = vsub.f32 %v2854_v58, %v1090_v13  ;;  %v1088_v12 = vpop.xlane.xlu1 %1087  ;;  %v1121_v20 = vsub.f32 %v2850_v45, %v1092_v19 }
 0x660   :  { %v1119_v48 = vsub.f32 %v2860_v33, %v1088_v12 }
 0x661   :  { %v1137_v29 = vmul.f32 1.442695, %v1120_v24  ;;  %v1139_v36 = vmul.f32 1.442695, %v1121_v20 }
 0x662   :  { %v1135_v40 = vmul.f32 1.442695, %v1119_v48 }
 0x663   :  { %2134 = vpow2.f32 %v1137_v29 }
 0x664   :  { %2136 = vpow2.f32 %v1135_v40 }
 0x666   :  { %v1096_v7 = vpop.xlane.xlu2 %1095  ;;  %v1098_v41 = vpop.xlane.xlu0 %1097 }
 0x667   :  { %v1123_v16 = vsub.f32 %v1075_v44, %v1096_v7  ;;  %v1124_v60 = vsub.f32 %v2869_v49, %v1098_v41  ;;  %v1094_v38 = vpop.xlane.xlu1 %1093 }
 0x668   :  { %v1122_v22 = vsub.f32 %v2874_v30, %v1094_v38 }
 0x669   :  { %v1143_v42 = vmul.f32 1.442695, %v1123_v16  ;;  %v2914_v11 = vpop.eup %2134  ;;  %v1145_v58 = vmul.f32 1.442695, %v1124_v60 }
 0x66a   :  { %v2916_v46 = vpop.eup %2136  ;;  %1169 = vadd.xlane.f32.xlu2 %v2914_v11  ;;  %v1141_v4 = vmul.f32 1.442695, %v1122_v22 }
 0x66b   :  { %2138 = vpow2.f32 %v1143_v42  ;;  %1167 = vadd.xlane.f32.xlu1 %v2916_v46 }
 0x66c   :  { %2140 = vpow2.f32 %v1145_v58 }
 0x66d   :  { %2142 = vpow2.f32 %v1139_v36 }
 0x66e   :  { %2144 = vpow2.f32 %v1141_v4  ;;  %v1102_v1 = vpop.xlane.xlu2 %1101 }
 0x66f   :  { %v1100_v26 = vpop.xlane.xlu1 %1099  ;;  %v1126_v45 = vsub.f32 %v2880_v32, %v1102_v1 }
 0x670   :  { %v1125_v23 = vsub.f32 %v2885_v6, %v1100_v26 }
 0x671   :  { %v2921_v33 = vpop.eup %2138  ;;  %v1149_v6 = vmul.f32 1.442695, %v1126_v45 }
 0x672   :  { %1175 = vadd.xlane.f32.xlu0 %v2921_v33  ;;  %v2924_v44 = vpop.eup %2140 }
 0x673   :  { %v2939_v8 = vpop.eup %2142 }
 0x674   :  { %v2943_v30 = vpop.eup %2144 }
 0x677   :  { %v1106_v40 = vpop.xlane.xlu1 %1105 }
 0x678   :  { %v1128_v60 = vsub.f32 %v2890_v28, %v1106_v40 }
 0x679   :  { %v994_v61 = vpop.permute.xlu0 %993 }
 0x67a   :  { %v1020_v63 = vadd.f32 %v2840_v9, %v994_v61  ;;  %1177 = vadd.xlane.f32.xlu0 %v2924_v44  ;;  %v1153_v22 = vmul.f32 1.442695, %v1128_v60 }
 0x67c   :  { %v1052_v3 = vmul.f32 0.2, %v1020_v63  ;;  %vm1036_vm12 = vcmp.ge.f32.partialorder %v1020_v63, 0.0 }
 0x67e   :  { %v1068_v49 = vsel %vm1036_vm12, %v1020_v63, %v1052_v3  ;;  %vm3291_vm12 = vcmp.gt.f32.partialorder %v2752_v47, 0.0 }
 0x67f   :  { %v2930_v27 = vsel %vm527_vm4, %v1068_v49, -1e+30 }
 0x682   :  { %1113 = vmax.xlane.f32.xlu0 %v2930_v27  ;;  %998 = vperm.xlu2 %2066, %v2828_v2   ;;  %v1147_v2 = vmul.f32 1.442695, %v1125_v23 }
 0x684   :  { %1003 = vperm.xlu1 %2065, %v2830_v17   ;;  %v1051_v17 = vmul.f32 0.2, %v1019_v56  ;;  %2146 = vpow2.f32 %v1147_v2 }
 0x685   :  { %2148 = vpow2.f32 %v1149_v6 }
 0x686   :  { %v1067_v37 = vsel %vm1035_vm7, %v1019_v56, %v1051_v17 }
 0x687   :  { %v2948_v57 = vsel %vm3290_vm0, %v1067_v37, -1e+30  ;;  %vm3292_vm0 = vcmp.gt.f32.partialorder %v2706_v31, 0.0 }
 0x68a   :  { %v2952_v19 = vpop.eup %2146 }
 0x68b   :  { %v2955_v24 = vpop.eup %2148 }
 0x6a4   :  { %v1104_v62 = vpop.xlane.xlu0 %1103 }
 0x6a5   :  { %v1127_v18 = vsub.f32 %v2898_v59, %v1104_v62 }
 0x6a7   :  { %v1151_v32 = vmul.f32 1.442695, %v1127_v18 }
 0x6a9   :  { %2150 = vpow2.f32 %v1151_v32 }
 0x6ab   :  { %1171 = vadd.xlane.f32.xlu2 %v2939_v8 }
 0x6ac   :  { %v1108_v43 = vpop.xlane.xlu0 %1107 }
 0x6ae   :  { %1173 = vadd.xlane.f32.xlu1 %v2943_v30 }
 0x6af   :  { %v2959_v29 = vpop.eup %2150 }
 0x6b3   :  { %1111 = vmax.xlane.f32.xlu2 %v2948_v57 }
 0x6b4   :  { %v1110_v13 = vpop.xlane.xlu0 %1109 }
 0x6b5   :  { %v1130_v12 = vsub.f32 %v2909_v14, %v1110_v13 }
 0x6b6   :  { %1179 = vadd.xlane.f32.xlu1 %v2952_v19 }
 0x6b7   :  { %v1157_v48 = vmul.f32 1.442695, %v1130_v12 }
 0x6b9   :  { %2152 = vpow2.f32 %v1157_v48 }
 0x6bb   :  { %1181 = vadd.xlane.f32.xlu2 %v2955_v24 }
 0x6bf   :  { %v2962_v59 = vpop.eup %2152 }
 0x6c3   :  { %1183 = vadd.xlane.f32.xlu2 %v2959_v29 }
 0x6cb   :  { %1189 = vadd.xlane.f32.xlu2 %v2962_v59 }
 0x6dd   :  { %v1170_v7 = vpop.xlane.xlu2 %1169 }
 0x6de   :  { %v1200_v16 = vmax.f32 %v1170_v7, 1e-30  ;;  %v1168_v41 = vpop.xlane.xlu1 %1167 }
 0x6df   :  { %v1199_v42 = vmax.f32 %v1168_v41, 1e-30 }
 0x6e0   :  { %2154 = vrcp.f32 %v1200_v16 }
 0x6e1   :  { %2156 = vrcp.f32 %v1199_v42 }
 0x6e2   :  { %2158 = vpow2.f32 %v1153_v22 }
 0x6e5   :  { %v999_v14 = vpop.permute.xlu2 %998  ;;  %v1176_v3 = vpop.xlane.xlu0 %1175 }
 0x6e6   :  { %v2155_v58 = vpop.eup %2154  ;;  %v1021_v61 = vadd.f32 %v2840_v9, %v999_v14  ;;  %v1203_v14 = vmax.f32 %v1176_v3, 1e-30 }
 0x6e7   :  { %v2157_v63 = vpop.eup %2156  ;;  %v1232_v49 = vmul.f32 %v2155_v58, %v2914_v11  ;;  %v1129_v11 = vsub.f32 %v2904_v52, %v1108_v43  ;;  %v2051_v58 = vld [vmem:[#allocation11 + $0x38] sm:$0xff] }
 0x6e8   :  { %v1053_v38 = vmul.f32 0.2, %v1021_v61  ;;  %v1231_v20 = vmul.f32 %v2157_v63, %v2916_v46  ;;  %vm1037_vm3 = vcmp.ge.f32.partialorder %v1021_v61, 0.0  ;;  %v2974_v62 = vpop.eup %2158  ;;  %1396 = vmatpush.bf16.msra.mxu1 %v2051_v58  ;;  %v2050_v63 = vld [vmem:[#allocation11 + $0x30] sm:$0xff] }
 0x6e9   :  { %v1155_v1 = vmul.f32 1.442695, %v1129_v11  ;;  %v2048_v11 = vld [vmem:[#allocation11 + $0x20] sm:$0xff] }
 0x6ea   :  { %v1247_v36 = vpack.c.bf16 %v1232_v49, %v1231_v20  ;;  %v1069_v4 = vsel %vm1037_vm3, %v1021_v61, %v1053_v38 }
 0x6eb   :  { %v2971_v26 = vsel %vm3291_vm12, %v1069_v4, -1e+30  ;;  %2160 = vpow2.f32 %v1155_v1  ;;  %v2049_v4 = vld [vmem:[#allocation11 + $0x28] sm:$0xff] }
 0x6ec   :  { %1267 = vmatmul.bf16.vlgmr.msrb.gmra.mxu0 %v1247_v36  ;;  %1115 = vmax.xlane.f32.xlu0 %v2971_v26 }
 0x6ed   :  { %v1178_v28 = vpop.xlane.xlu0 %1177  ;;  %1397 = vmatpush.bf16.msra.mxu1 %v2050_v63 }
 0x6ee   :  { %v1204_v42 = vmax.f32 %v1178_v28, 1e-30 }
 0x6f1   :  { %v2985_v18 = vpop.eup %2160  ;;  %1398 = vmatpush.bf16.msra.mxu1 %v2049_v4 }
 0x6f4   :  { %1185 = vadd.xlane.f32.xlu0 %v2974_v62 }
 0x6f5   :  { %v1114_v2 = vpop.xlane.xlu0 %1113  ;;  %1399 = vmatpush.bf16.msra.mxu1 %v2048_v11 }
 0x6f6   :  { %v1004_v46 = vpop.permute.xlu1 %1003  ;;  %v1132_v37 = vsub.f32 %v2930_v27, %v1114_v2  ;;  %v2045_v2 = vld [vmem:[#allocation11 + $0x8] sm:$0xff] }
 0x6f7   :  { %v1022_v23 = vadd.f32 %v2840_v9, %v1004_v46 }
 0x6f8   :  { %v1161_v6 = vmul.f32 1.442695, %v1132_v37 }
 0x6f9   :  { %v1054_v56 = vmul.f32 0.2, %v1022_v23  ;;  %vm1038_vm7 = vcmp.ge.f32.partialorder %v1022_v23, 0.0 }
 0x6fa   :  { %2162 = vpow2.f32 %v1161_v6 }
 0x6fb   :  { %v1070_v17 = vsel %vm1038_vm7, %v1022_v23, %v1054_v56 }
 0x6fc   :  { %v2981_v45 = vsel %vm3292_vm0, %v1070_v17, -1e+30  ;;  %v2044_v17 = vld [vmem:[#allocation11] sm:$0xff]  ;;  %vm3293_vm0 = vcmp.gt.f32.partialorder %v2548_v51, 0.0 }
 0x6fd   :  { %1117 = vmax.xlane.f32.xlu1 %v2981_v45 }
 0x700   :  { %v2988_v9 = vpop.eup %2162 }
 0x705   :  { %1187 = vadd.xlane.f32.xlu1 %v2985_v18 }
 0x70d   :  { %1193 = vadd.xlane.f32.xlu1 %v2988_v9 }
 0x71e   :  { %v1172_v52 = vpop.xlane.xlu2 %1171 }
 0x71f   :  { %v1201_v43 = vmax.f32 %v1172_v52, 1e-30 }
 0x721   :  { %v1174_v32 = vpop.xlane.xlu1 %1173  ;;  %2164 = vrcp.f32 %v1201_v43 }
 0x722   :  { %v1202_v13 = vmax.f32 %v1174_v32, 1e-30 }
 0x724   :  { %2166 = vrcp.f32 %v1202_v13 }
 0x726   :  { %v1112_v12 = vpop.xlane.xlu2 %1111 }
 0x727   :  { %v1131_v48 = vsub.f32 %v2948_v57, %v1112_v12  ;;  %v2165_v27 = vpop.eup %2164 }
 0x728   :  { %v1233_v16 = vmul.f32 %v2165_v27, %v2939_v8 }
 0x729   :  { %v1159_v40 = vmul.f32 1.442695, %v1131_v48  ;;  %v3008_v48 = vld [vmem:[%s3280_s8] ss:$0 sm:$0xff] }
 0x72a   :  { %v2167_v7 = vpop.eup %2166 }
 0x72b   :  { %2168 = vpow2.f32 %v1159_v40  ;;  %v1234_v41 = vmul.f32 %v2167_v7, %v2943_v30  ;;  %v1180_v30 = vpop.xlane.xlu1 %1179 }
 0x72c   :  { %2170 = vrcp.f32 %v1204_v42  ;;  %v1205_v36 = vmax.f32 %v1180_v30, 1e-30 }
 0x72d   :  { %v1248_v60 = vpack.c.bf16 %v1234_v41, %v1233_v16  ;;  %2172 = vrcp.f32 %v1203_v14 }
 0x72e   :  { %v1182_v38 = vpop.xlane.xlu2 %1181 }
 0x72f   :  { %1272 = vmatmul.bf16.gmra.mxu0 %v1248_v60  ;;  %v1206_v3 = vmax.f32 %v1182_v38, 1e-30 }
 0x731   :  { %v2994_v61 = vpop.eup %2168  ;;  %2174 = vrcp.f32 %v1206_v3 }
 0x732   :  { %1191 = vadd.xlane.f32.xlu0 %v2994_v61  ;;  %v2171_v57 = vpop.eup %2170  ;;  %2176 = vrcp.f32 %v1205_v36 }
 0x733   :  { %v2173_v49 = vpop.eup %2172  ;;  %v1236_v8 = vmul.f32 %v2171_v57, %v2924_v44  ;;  %v2047_v44 = vld [vmem:[#allocation11 + $0x18] sm:$0xff] }
 0x734   :  { %v1235_v20 = vmul.f32 %v2173_v49, %v2921_v33  ;;  %1400 = vmatpush.bf16.msra.mxu1 %v2047_v44  ;;  %v2046_v33 = vld [vmem:[#allocation11 + $0x10] sm:$0xff] }
 0x736   :  { %v1249_v22 = vpack.c.bf16 %v1236_v8, %v1235_v20  ;;  %v1184_v52 = vpop.xlane.xlu2 %1183 }
 0x737   :  { %v2175_v28 = vpop.eup %2174  ;;  %v1207_v32 = vmax.f32 %v1184_v52, 1e-30 }
 0x738   :  { %v2177_v46 = vpop.eup %2176  ;;  %v1238_v23 = vmul.f32 %v2175_v28, %v2955_v24  ;;  %1401 = vmatpush.bf16.msra.mxu1 %v2046_v33 }
 0x739   :  { %v1237_v56 = vmul.f32 %v2177_v46, %v2952_v19 }
 0x73b   :  { %v1250_v1 = vpack.c.bf16 %v1238_v23, %v1237_v56 }
 0x73c   :  { %1402 = vmatpush.bf16.msra.mxu1 %v2045_v2 }
 0x73e   :  { %v1190_v14 = vpop.xlane.xlu2 %1189 }
 0x73f   :  { %1277 = vmatmul.bf16.gmra.mxu0 %v1249_v22  ;;  %v1210_v8 = vmax.f32 %v1190_v14, 1e-30 }
 0x740   :  { %1403 = vmatpush.bf16.msra.mxu1 %v2044_v17 }
 0x74f   :  { %1282 = vmatmul.bf16.gmra.mxu0 %v1250_v1 }
 0x75f   :  { %v1116_v37 = vpop.xlane.xlu0 %1115 }
 0x760   :  { %v1133_v6 = vsub.f32 %v2971_v26, %v1116_v37 }
 0x762   :  { %v1163_v43 = vmul.f32 1.442695, %v1133_v6 }
 0x764   :  { %2178 = vpow2.f32 %v1163_v43 }
 0x765   :  { %2180 = vrcp.f32 %v1207_v32 }
 0x767   :  { %v1186_v24 = vpop.xlane.xlu0 %1185 }
 0x768   :  { %v1208_v19 = vmax.f32 %v1186_v24, 1e-30 }
 0x769   :  { %v1268_v13 = vpop.f32.mrf.mxu0 }
 0x76a   :  { %v3002_v12 = vpop.eup %2178  ;;  %2182 = vrcp.f32 %v1208_v19  ;;  %v1269_v40 = vadd.f32 %v3008_v48, %v1268_v13 }
 0x76b   :  { %1195 = vadd.xlane.f32.xlu2 %v3002_v12  ;;  %v2181_v27 = vpop.eup %2180 }
 0x76c   :  { %v1239_v42 = vmul.f32 %v2181_v27, %v2959_v29  ;;  %v1308_v49 = vmax.f32 %v1269_v40, 0.0 }
 0x770   :  { %v2183_v26 = vpop.eup %2182  ;;  %v1118_v7 = vpop.xlane.xlu1 %1117 }
 0x771   :  { %v1134_v16 = vsub.f32 %v2981_v45, %v1118_v7  ;;  %v1270_v41 = vpop.f32.mrf.mxu0  ;;  %v1240_v60 = vmul.f32 %v2183_v26, %v2974_v62 }
 0x772   :  { %v1271_v58 = vadd.f32 %v3008_v48, %v1270_v41 }
 0x773   :  { %v1165_v63 = vmul.f32 1.442695, %v1134_v16  ;;  %v1251_v57 = vpack.c.bf16 %v1240_v60, %v1239_v42 }
 0x774   :  { %v1309_v38 = vmax.f32 %v1271_v58, 0.0 }
 0x775   :  { %2184 = vpow2.f32 %v1165_v63  ;;  %1287 = vmatmul.bf16.gmra.mxu0 %v1251_v57 }
 0x776   :  { %v1324_v30 = vpack.c.bf16 %v1309_v38, %v1308_v49  ;;  %2186 = vrcp.f32 %v1210_v8 }
 0x778   :  { %1404 = vmatmul.bf16.vlgmr.msra.gmra.mxu1 %v1324_v30  ;;  %v1188_v20 = vpop.xlane.xlu1 %1187 }
 0x779   :  { %v1209_v45 = vmax.f32 %v1188_v20, 1e-30 }
 0x77b   :  { %v2185_v3 = vpop.eup %2184  ;;  %2188 = vrcp.f32 %v1209_v45 }
 0x77c   :  { %1197 = vadd.xlane.f32.xlu0 %v2185_v3  ;;  %v2187_v29 = vpop.eup %2186 }
 0x77d   :  { %v1242_v36 = vmul.f32 %v2187_v29, %v2962_v59 }
 0x780   :  { %v1194_v28 = vpop.xlane.xlu1 %1193 }
 0x781   :  { %v2189_v62 = vpop.eup %2188  ;;  %v1212_v11 = vmax.f32 %v1194_v28, 1e-30 }
 0x782   :  { %v1241_v22 = vmul.f32 %v2189_v62, %v2985_v18 }
 0x783   :  { %2190 = vrcp.f32 %v1212_v11 }
 0x784   :  { %v1252_v4 = vpack.c.bf16 %v1242_v36, %v1241_v22 }
 0x786   :  { %1292 = vmatmul.bf16.gmra.mxu0 %v1252_v4 }
 0x789   :  { %v2191_v56 = vpop.eup %2190 }
 0x78a   :  { %v1244_v2 = vmul.f32 %v2191_v56, %v2988_v9 }
 0x7a5   :  { %v1192_v46 = vpop.xlane.xlu0 %1191 }
 0x7a6   :  { %v1211_v23 = vmax.f32 %v1192_v46, 1e-30 }
 0x7a8   :  { %2192 = vrcp.f32 %v1211_v23 }
 0x7ac   :  { %v1273_v44 = vpop.f32.mrf.mxu0 }
 0x7ad   :  { %v1274_v18 = vadd.f32 %v3008_v48, %v1273_v44 }
 0x7ae   :  { %v2193_v1 = vpop.eup %2192 }
 0x7af   :  { %v1243_v33 = vmul.f32 %v2193_v1, %v2994_v61  ;;  %v1310_v6 = vmax.f32 %v1274_v18, 0.0 }
 0x7b1   :  { %v1253_v17 = vpack.c.bf16 %v1244_v2, %v1243_v33 }
 0x7b3   :  { %1297 = vmatmul.bf16.gmra.mxu0 %v1253_v17 }
 0x7b4   :  { %v1275_v59 = vpop.f32.mrf.mxu0 }
 0x7b5   :  { %v1276_v37 = vadd.f32 %v3008_v48, %v1275_v59 }
 0x7b7   :  { %v1311_v52 = vmax.f32 %v1276_v37, 0.0 }
 0x7b9   :  { %v1325_v43 = vpack.c.bf16 %v1311_v52, %v1310_v6 }
 0x7bb   :  { %1409 = vmatmul.bf16.gmra.mxu1 %v1325_v43 }
 0x7bc   :  { %v1278_v32 = vpop.f32.mrf.mxu0 }
 0x7bd   :  { %v1279_v24 = vadd.f32 %v3008_v48, %v1278_v32 }
 0x7bf   :  { %v1312_v61 = vmax.f32 %v1279_v24, 0.0 }
 0x7c4   :  { %v1280_v19 = vpop.f32.mrf.mxu0 }
 0x7c5   :  { %v1281_v13 = vadd.f32 %v3008_v48, %v1280_v19 }
 0x7c7   :  { %v1313_v27 = vmax.f32 %v1281_v13, 0.0 }
 0x7c9   :  { %v1326_v9 = vpack.c.bf16 %v1313_v27, %v1312_v61 }
 0x7cb   :  { %1414 = vmatmul.bf16.gmra.mxu1 %v1326_v9 }
 0x7cc   :  { %v1283_v26 = vpop.f32.mrf.mxu0 }
 0x7cd   :  { %v1284_v40 = vadd.f32 %v3008_v48, %v1283_v26 }
 0x7cf   :  { %v1314_v41 = vmax.f32 %v1284_v40, 0.0 }
 0x7d4   :  { %v1285_v7 = vpop.f32.mrf.mxu0 }
 0x7d5   :  { %v1286_v16 = vadd.f32 %v3008_v48, %v1285_v7 }
 0x7d7   :  { %v1315_v42 = vmax.f32 %v1286_v16, 0.0 }
 0x7d9   :  { %v1327_v60 = vpack.c.bf16 %v1315_v42, %v1314_v41 }
 0x7db   :  { %1419 = vmatmul.bf16.gmra.mxu1 %v1327_v60 }
 0x7de   :  { %v1196_v14 = vpop.xlane.xlu2 %1195 }
 0x7df   :  { %v1213_v58 = vmax.f32 %v1196_v14, 1e-30 }
 0x7e1   :  { %2194 = vrcp.f32 %v1213_v58 }
 0x7e7   :  { %v2195_v8 = vpop.eup %2194 }
 0x7e8   :  { %v1245_v45 = vmul.f32 %v2195_v8, %v3002_v12 }
 0x7ef   :  { %v1198_v63 = vpop.xlane.xlu0 %1197 }
 0x7f0   :  { %v1214_v57 = vmax.f32 %v1198_v63, 1e-30 }
 0x7f2   :  { %2196 = vrcp.f32 %v1214_v57  ;;  %v1288_v49 = vpop.f32.mrf.mxu0 }
 0x7f3   :  { %v1289_v20 = vadd.f32 %v3008_v48, %v1288_v49 }
 0x7f5   :  { %v1405_v38 = vpop.f32.mrf.mxu1  ;;  %v1316_v4 = vmax.f32 %v1289_v20, 0.0 }
 0x7f6   :  { %1469 = vperm.xlu1 %2065, %v1405_v38  }
 0x7f8   :  { %v2197_v30 = vpop.eup %2196 }
 0x7f9   :  { %v1246_v29 = vmul.f32 %v2197_v30, %v2185_v3 }
 0x7fa   :  { %v1290_v62 = vpop.f32.mrf.mxu0 }
 0x7fb   :  { %v1291_v22 = vadd.f32 %v3008_v48, %v1290_v62  ;;  %v1254_v36 = vpack.c.bf16 %v1246_v29, %v1245_v45 }
 0x7fd   :  { %v1317_v28 = vmax.f32 %v1291_v22, 0.0  ;;  %1302 = vmatmul.bf16.gmra.mxu0 %v1254_v36  ;;  %v1407_v11 = vpop.f32.mrf.mxu1  ;;  %v1453_v36 = vld [vmem:[%s3282_s10] sm:$0x1] }
 0x7fe   :  { %1474 = vperm.xlu2 %2066, %v1407_v11   ;;  %v3028_v46 = vpack.c.bf16 %v1407_v11, %v1405_v38 }
 0x7ff   :  { %v1328_v23 = vpack.c.bf16 %v1317_v28, %v1316_v4 }
 0x801   :  { %1424 = vmatmul.bf16.gmra.mxu1 %v1328_v23 }
 0x803   :  { %v1293_v56 = vpop.f32.mrf.mxu0 }
 0x804   :  { %v1294_v44 = vadd.f32 %v3008_v48, %v1293_v56 }
 0x806   :  { %v1318_v3 = vmax.f32 %v1294_v44, 0.0 }
 0x80b   :  { %v1295_v1 = vpop.f32.mrf.mxu0 }
 0x80c   :  { %v1296_v12 = vadd.f32 %v3008_v48, %v1295_v1 }
 0x80e   :  { %v1319_v33 = vmax.f32 %v1296_v12, 0.0 }
 0x810   :  { %v1329_v2 = vpack.c.bf16 %v1319_v33, %v1318_v3 }
 0x812   :  { %1429 = vmatmul.bf16.gmra.mxu1 %v1329_v2 }
 0x830   :  { %v1298_v17 = vpop.f32.mrf.mxu0 }
 0x831   :  { %v1299_v18 = vadd.f32 %v3008_v48, %v1298_v17 }
 0x833   :  { %v1320_v52 = vmax.f32 %v1299_v18, 0.0 }
 0x838   :  { %v1410_v59 = vpop.f32.mrf.mxu1  ;;  %v1300_v37 = vpop.f32.mrf.mxu0 }
 0x839   :  { %v1301_v6 = vadd.f32 %v3008_v48, %v1300_v37  ;;  %1479 = vperm.xlu0 %2064, %v1410_v59  }
 0x83b   :  { %v1321_v43 = vmax.f32 %v1301_v6, 0.0 }
 0x83d   :  { %v1330_v32 = vpack.c.bf16 %v1321_v43, %v1320_v52 }
 0x83f   :  { %1434 = vmatmul.bf16.gmra.mxu1 %v1330_v32 }
 0x840   :  { %v1412_v24 = vpop.f32.mrf.mxu1 }
 0x841   :  { %1484 = vperm.xlu1 %2065, %v1412_v24   ;;  %v1446_v19 = vpack.c.bf16 %v1412_v24, %v1410_v59 }
 0x848   :  { %v1415_v13 = vpop.f32.mrf.mxu1 }
 0x849   :  { %1489 = vperm.xlu0 %2064, %v1415_v13  }
 0x850   :  { %v1417_v61 = vpop.f32.mrf.mxu1 }
 0x851   :  { %1494 = vperm.xlu2 %2066, %v1417_v61   ;;  %v1447_v27 = vpack.c.bf16 %v1417_v61, %v1415_v13 }
 0x858   :  { %v1420_v9 = vpop.f32.mrf.mxu1  ;;  %v1475_v4 = vpop.permute.xlu2 %1474 }
 0x859   :  { %1499 = vperm.xlu2 %2066, %v1420_v9  }
 0x860   :  { %v1422_v26 = vpop.f32.mrf.mxu1 }
 0x861   :  { %1504 = vperm.xlu2 %2066, %v1422_v26   ;;  %v1448_v40 = vpack.c.bf16 %v1422_v26, %v1420_v9 }
 0x868   :  { %v1470_v23 = vpop.permute.xlu1 %1469 }
 0x87a   :  { %v1303_v7 = vpop.f32.mrf.mxu0 }
 0x87b   :  { %v1304_v41 = vadd.f32 %v3008_v48, %v1303_v7 }
 0x87d   :  { %v1322_v14 = vmax.f32 %v1304_v41, 0.0 }
 0x87e   :  { %v1425_v16 = vpop.f32.mrf.mxu1 }
 0x87f   :  { %1509 = vperm.xlu0 %2064, %v1425_v16  }
 0x882   :  { %v1305_v42 = vpop.f32.mrf.mxu0 }
 0x883   :  { %v1306_v60 = vadd.f32 %v3008_v48, %v1305_v42 }
 0x885   :  { %v1323_v58 = vmax.f32 %v1306_v60, 0.0 }
 0x886   :  { %v1427_v63 = vpop.f32.mrf.mxu1 }
 0x887   :  { %1514 = vperm.xlu1 %2065, %v1427_v63   ;;  %v1331_v57 = vpack.c.bf16 %v1323_v58, %v1322_v14  ;;  %v1449_v49 = vpack.c.bf16 %v1427_v63, %v1425_v16 }
 0x889   :  { %1439 = vmatmul.bf16.gmra.mxu1 %v1331_v57 }
 0x88f   :  { %v1430_v38 = vpop.f32.mrf.mxu1 }
 0x890   :  { %1519 = vperm.xlu2 %2066, %v1430_v38  }
 0x897   :  { %v1432_v8 = vpop.f32.mrf.mxu1 }
 0x898   :  { %1524 = vperm.xlu1 %2065, %v1432_v8   ;;  %v1450_v30 = vpack.c.bf16 %v1432_v8, %v1430_v38 }
 0x8ab   :  { %v1495_v28 = vpop.permute.xlu2 %1494  ;;  %v1480_v11 = vpop.permute.xlu0 %1479 }
 0x8b3   :  { %v3055_v1 = vpop.permute.xlu2 %1499  ;;  %v1485_v18 = vpop.permute.xlu1 %1484 }
 0x8bb   :  { %v1490_v12 = vpop.permute.xlu0 %1489  ;;  %v1505_v51 = vpop.permute.xlu2 %1504 }
 0x8bc   :  { %v3036_v20 = vpop.f32.mrf.mxu1 }
 0x8c4   :  { %v3038_v45 = vpop.f32.mrf.mxu1 }
 0x8c5   :  { %v1451_v22 = vpack.c.bf16 %v3038_v45, %v3036_v20 }
 0x8f1   :  { %v1510_v58 = vpop.permute.xlu0 %1509 }
 0x906   :  { %v3040_v29 = vpop.f32.mrf.mxu1 }
 0x90e   :  { %v3042_v62 = vpop.f32.mrf.mxu1 }
 0x90f   :  { %v1452_v48 = vpack.c.bf16 %v3042_v62, %v3040_v29 }
 0x911   :  { %1454 = vmatpush.bf16.xpose.msrb.mxu2 %v1452_v48  ;;  %1800 = vmatpush.bf16.msrb.mxu3 %v1452_v48 }
 0x915   :  { %1801 = vmatpush.bf16.msrb.mxu3 %v1451_v22 }
 0x919   :  { %1455 = vmatpush.bf16.xpose.msrb.mxu2 %v1451_v22  ;;  %1802 = vmatpush.bf16.msrb.mxu3 %v1450_v30 }
 0x91d   :  { %1803 = vmatpush.bf16.msrb.mxu3 %v1449_v49 }
 0x921   :  { %1456 = vmatpush.bf16.xpose.msrb.mxu2 %v1450_v30  ;;  %1804 = vmatpush.bf16.msrb.mxu3 %v1448_v40 }
 0x925   :  { %1805 = vmatpush.bf16.msrb.mxu3 %v1447_v27 }
 0x929   :  { %1457 = vmatpush.bf16.xpose.msrb.mxu2 %v1449_v49  ;;  %1806 = vmatpush.bf16.msrb.mxu3 %v1446_v19  ;;  %v1515_v49 = vpop.permute.xlu1 %1514 }
 0x92d   :  { %1807 = vmatpush.bf16.msrb.mxu3 %v3028_v46 }
 0x931   :  { %1458 = vmatpush.bf16.xpose.msrb.mxu2 %v1448_v40  ;;  %v3112_v53 = vpop.permute.xlu1 %1524 }
 0x939   :  { %1459 = vmatpush.bf16.xpose.msrb.mxu2 %v1447_v27 }
 0x941   :  { %1460 = vmatpush.bf16.xpose.msrb.mxu2 %v1446_v19 }
 0x949   :  { %1461 = vmatpush.bf16.xpose.msrb.mxu2 %v3028_v46 }
 0x950   :  { %1462 = vmatmul.bf16.vlgmr.msrb.gmra.mxu2 %v1453_v36 }
 0x9d3   :  { %v1463_v56 = vpop.f32.mrf.mxu2 }
 0x9d4   :  { %v3053_v44 = vperm.slane %v1463_v56, 0 }
 0x9d6   :  { %v1550_v3 = vadd.f32 %v3053_v44, %v1480_v11  ;;  %v1549_v33 = vadd.f32 %v3053_v44, %v1475_v4  ;;  %v1548_v46 = vadd.f32 %v3053_v44, %v1470_v23  ;;  %v1552_v2 = vadd.f32 %v3053_v44, %v1490_v12 }
 0x9d7   :  { %v1553_v17 = vadd.f32 %v3053_v44, %v1495_v28  ;;  %v1551_v52 = vadd.f32 %v3053_v44, %v1485_v18  ;;  %v1555_v54 = vadd.f32 %v3053_v44, %v1505_v51  ;;  %v1556_v10 = vadd.f32 %v3053_v44, %v1510_v58 }
 0x9d8   :  { %vm1566_vm3 = vcmp.ge.f32.partialorder %v1550_v3, 0.0  ;;  %v1582_v59 = vmul.f32 0.2, %v1550_v3  ;;  %vm1565_vm12 = vcmp.ge.f32.partialorder %v1549_v33, 0.0  ;;  %v1581_v37 = vmul.f32 0.2, %v1549_v33 }
 0x9d9   :  { %vm1564_vm7 = vcmp.ge.f32.partialorder %v1548_v46, 0.0  ;;  %v1580_v6 = vmul.f32 0.2, %v1548_v46  ;;  %v1584_v9 = vmul.f32 0.2, %v1552_v2  ;;  %vm1567_vm8 = vcmp.ge.f32.partialorder %v1551_v52, 0.0 }
 0x9da   :  { %v1598_v43 = vsel %vm1566_vm3, %v1550_v3, %v1582_v59  ;;  %v1597_v32 = vsel %vm1565_vm12, %v1549_v33, %v1581_v37  ;;  %v1585_v26 = vmul.f32 0.2, %v1553_v17  ;;  %vm1568_vm3 = vcmp.ge.f32.partialorder %v1552_v2, 0.0 }
 0x9db   :  { %v3065_v24 = vsel %vm3293_vm0, %v1598_v43, -1e+30  ;;  %v1613_v19 = vsel %vm515_vm1, %v1597_v32, -1e+30  ;;  %v1596_v13 = vsel %vm1564_vm7, %v1548_v46, %v1580_v6  ;;  %v1465_v61 = vpop.f32.mrf.mxu2  ;;  %vm1569_vm12 = vcmp.ge.f32.partialorder %v1553_v17, 0.0 }
 0x9dc   :  { %1632 = vmax.xlane.f32.xlu2 %v3065_v24  ;;  %1630 = vmax.xlane.f32.xlu0 %v1613_v19  ;;  %v1612_v27 = vsel %vm514_vm2, %v1596_v13, -1e+30  ;;  %v1583_v40 = vmul.f32 0.2, %v1551_v52  ;;  %v1600_v7 = vsel %vm1568_vm3, %v1552_v2, %v1584_v9  ;;  %v1601_v16 = vsel %vm1569_vm12, %v1553_v17, %v1585_v26 }
 0x9dd   :  { %1628 = vmax.xlane.f32.xlu1 %v1612_v27  ;;  %v3075_v42 = vsel %vm518_vm9, %v1600_v7, -1e+30  ;;  %v3079_v55 = vsel %vm519_vm14, %v1601_v16, -1e+30  ;;  %v1587_v14 = vmul.f32 0.2, %v1555_v54  ;;  %v1557_v21 = vadd.f32 %v3053_v44, %v1515_v49 }
 0x9de   :  { %v1599_v41 = vsel %vm1567_vm8, %v1551_v52, %v1583_v40  ;;  %vm1571_vm1 = vcmp.ge.f32.partialorder %v1555_v54, 0.0  ;;  %v1588_v34 = vmul.f32 0.2, %v1556_v10  ;;  %vm1572_vm2 = vcmp.ge.f32.partialorder %v1556_v10, 0.0 }
 0x9df   :  { %v1615_v60 = vsel %vm517_vm11, %v1599_v41, -1e+30  ;;  %v1603_v63 = vsel %vm1571_vm1, %v1555_v54, %v1587_v14  ;;  %v1589_v30 = vmul.f32 0.2, %v1557_v21  ;;  %vm1573_vm9 = vcmp.ge.f32.partialorder %v1557_v21, 0.0 }
 0x9e0   :  { %v3088_v57 = vsel %vm521_vm10, %v1603_v63, -1e+30  ;;  %v1604_v38 = vsel %vm1572_vm2, %v1556_v10, %v1588_v34  ;;  %v1554_v35 = vadd.f32 %v3053_v44, %v3055_v1  ;;  %v1559_v63 = vadd.f32 %v3053_v44, %v3112_v53 }
 0x9e1   :  { %v3094_v8 = vsel %vm522_vm15, %v1604_v38, -1e+30  ;;  %v1605_v15 = vsel %vm1573_vm9, %v1557_v21, %v1589_v30  ;;  %vm3295_vm8 = vcmp.gt.f32.partialorder %v2655_v0, 0.0  ;;  %vm3297_vm0 = vcmp.gt.f32.partialorder %v2706_v31, 0.0 }
 0x9e2   :  { %v3100_v48 = vsel %vm523_vm6, %v1605_v15, -1e+30  ;;  %v1586_v22 = vmul.f32 0.2, %v1554_v35  ;;  %vm1570_vm10 = vcmp.ge.f32.partialorder %v1554_v35, 0.0  ;;  %vm1575_vm6 = vcmp.ge.f32.partialorder %v1559_v63, 0.0 }
 0x9e4   :  { %1636 = vmax.xlane.f32.xlu2 %v3075_v42  ;;  %1638 = vmax.xlane.f32.xlu0 %v3079_v55  ;;  %v1602_v36 = vsel %vm1570_vm10, %v1554_v35, %v1586_v22 }
 0x9e5   :  { %1634 = vmax.xlane.f32.xlu1 %v1615_v60  ;;  %v3108_v4 = vsel %vm520_vm5, %v1602_v36, -1e+30  ;;  %vm3294_vm5 = vcmp.gt.f32.partialorder %v2689_v39, 0.0 }
 0x9ec   :  { %1642 = vmax.xlane.f32.xlu2 %v3088_v57 }
 0x9f4   :  { %1644 = vmax.xlane.f32.xlu2 %v3094_v8 }
 0x9f8   :  { %1529 = vperm.xlu0 %2064, %v3036_v20  }
 0x9fc   :  { %1646 = vmax.xlane.f32.xlu2 %v3100_v48 }
 0x9fe   :  { %1534 = vperm.xlu1 %2065, %v3038_v45   ;;  %v1520_v45 = vpop.permute.xlu2 %1519 }
 0x9ff   :  { %v1558_v50 = vadd.f32 %v3053_v44, %v1520_v45 }
 0xa01   :  { %v1590_v2 = vmul.f32 0.2, %v1558_v50  ;;  %vm1574_vm11 = vcmp.ge.f32.partialorder %v1558_v50, 0.0 }
 0xa03   :  { %v1606_v59 = vsel %vm1574_vm11, %v1558_v50, %v1590_v2 }
 0xa04   :  { %v3124_v52 = vsel %vm524_vm13, %v1606_v59, -1e+30 }
 0xa28   :  { %1640 = vmax.xlane.f32.xlu1 %v3108_v4 }
 0xa41   :  { %1539 = vperm.xlu1 %2065, %v3040_v29  }
 0xa4f   :  { %v1631_v20 = vpop.xlane.xlu0 %1630  ;;  %v1633_v12 = vpop.xlane.xlu2 %1632 }
 0xa50   :  { %v1661_v28 = vsub.f32 %v1613_v19, %v1631_v20  ;;  %v1629_v11 = vpop.xlane.xlu1 %1628  ;;  %v1662_v29 = vsub.f32 %v3065_v24, %v1633_v12 }
 0xa51   :  { %v1660_v23 = vsub.f32 %v1612_v27, %v1629_v11 }
 0xa52   :  { %v1678_v56 = vmul.f32 1.442695, %v1661_v28  ;;  %v1680_v18 = vmul.f32 1.442695, %v1662_v29 }
 0xa53   :  { %v1676_v1 = vmul.f32 1.442695, %v1660_v23 }
 0xa54   :  { %2198 = vpow2.f32 %v1678_v56 }
 0xa55   :  { %2200 = vpow2.f32 %v1676_v1 }
 0xa56   :  { %2202 = vpow2.f32 %v1680_v18 }
 0xa57   :  { %v1637_v6 = vpop.xlane.xlu2 %1636  ;;  %v1639_v19 = vpop.xlane.xlu0 %1638 }
 0xa58   :  { %v1635_v33 = vpop.xlane.xlu1 %1634  ;;  %v1664_v43 = vsub.f32 %v3075_v42, %v1637_v6  ;;  %v1665_v25 = vsub.f32 %v3079_v55, %v1639_v19 }
 0xa59   :  { %v1663_v17 = vsub.f32 %v1615_v60, %v1635_v33 }
 0xa5a   :  { %v3115_v3 = vpop.eup %2198  ;;  %v1684_v24 = vmul.f32 1.442695, %v1664_v43  ;;  %v1686_v40 = vmul.f32 1.442695, %v1665_v25 }
 0xa5b   :  { %v3117_v46 = vpop.eup %2200  ;;  %1710 = vadd.xlane.f32.xlu2 %v3115_v3  ;;  %v1682_v37 = vmul.f32 1.442695, %v1663_v17 }
 0xa5c   :  { %1708 = vadd.xlane.f32.xlu0 %v3117_v46  ;;  %v3128_v32 = vpop.eup %2202 }
 0xa5d   :  { %2204 = vpow2.f32 %v1682_v37 }
 0xa5e   :  { %2206 = vpow2.f32 %v1684_v24 }
 0xa5f   :  { %v1643_v61 = vpop.xlane.xlu2 %1642  ;;  %2208 = vpow2.f32 %v1686_v40 }
 0xa60   :  { %v1667_v27 = vsub.f32 %v3088_v57, %v1643_v61  ;;  %v1591_v57 = vmul.f32 0.2, %v1559_v63 }
 0xa62   :  { %v1690_v16 = vmul.f32 1.442695, %v1667_v27  ;;  %v1607_v49 = vsel %vm1575_vm6, %v1559_v63, %v1591_v57 }
 0xa63   :  { %v3131_v13 = vpop.eup %2204  ;;  %v3164_v39 = vsel %vm3295_vm8, %v1607_v49, -1e+30 }
 0xa64   :  { %1648 = vmax.xlane.f32.xlu0 %v3124_v52  ;;  %v3137_v7 = vpop.eup %2206  ;;  %2210 = vpow2.f32 %v1690_v16 }
 0xa65   :  { %v3147_v60 = vpop.eup %2208 }
 0xa67   :  { %v1645_v10 = vpop.xlane.xlu2 %1644 }
 0xa68   :  { %v1668_v34 = vsub.f32 %v3094_v8, %v1645_v10 }
 0xa6a   :  { %v1530_v41 = vpop.permute.xlu0 %1529  ;;  %v1692_v38 = vmul.f32 1.442695, %v1668_v34 }
 0xa6b   :  { %1712 = vadd.xlane.f32.xlu1 %v3128_v32  ;;  %v1560_v55 = vadd.f32 %v3053_v44, %v1530_v41 }
 0xa6c   :  { %1714 = vadd.xlane.f32.xlu0 %v3131_v13  ;;  %2212 = vpow2.f32 %v1692_v38 }
 0xa6d   :  { %v1592_v14 = vmul.f32 0.2, %v1560_v55  ;;  %vm1576_vm15 = vcmp.ge.f32.partialorder %v1560_v55, 0.0 }
 0xa6f   :  { %v1608_v58 = vsel %vm1576_vm15, %v1560_v55, %v1592_v14  ;;  %v1647_v22 = vpop.xlane.xlu2 %1646 }
 0xa70   :  { %v1535_v9 = vpop.permute.xlu1 %1534  ;;  %v3155_v5 = vsel %vm3294_vm5, %v1608_v58, -1e+30  ;;  %v1669_v36 = vsub.f32 %v3100_v48, %v1647_v22 }
 0xa71   :  { %v1561_v26 = vadd.f32 %v3053_v44, %v1535_v9 }
 0xa72   :  { %v1694_v20 = vmul.f32 1.442695, %v1669_v36 }
 0xa73   :  { %v1593_v51 = vmul.f32 0.2, %v1561_v26  ;;  %vm1577_vm14 = vcmp.ge.f32.partialorder %v1561_v26, 0.0  ;;  %1544 = vperm.xlu2 %2066, %v3042_v62   ;;  %v3150_v62 = vpop.eup %2210 }
 0xa74   :  { %1716 = vadd.xlane.f32.xlu0 %v3137_v7  ;;  %v3167_v35 = vpop.eup %2212 }
 0xa75   :  { %v1609_v54 = vsel %vm1577_vm14, %v1561_v26, %v1593_v51 }
 0xa76   :  { %v3143_v42 = vsel %vm527_vm4, %v1609_v54, -1e+30  ;;  %vm3296_vm4 = vcmp.gt.f32.partialorder %v2752_v47, 0.0 }
 0xa77   :  { %1654 = vmax.xlane.f32.xlu1 %v3143_v42 }
 0xa7c   :  { %1718 = vadd.xlane.f32.xlu0 %v3147_v60 }
 0xa7f   :  { %1722 = vadd.xlane.f32.xlu1 %v3150_v62 }
 0xa84   :  { %1652 = vmax.xlane.f32.xlu0 %v3155_v5 }
 0xa9b   :  { %v1641_v21 = vpop.xlane.xlu1 %1640 }
 0xa9c   :  { %v1666_v30 = vsub.f32 %v3108_v4, %v1641_v21  ;;  %1650 = vmax.xlane.f32.xlu2 %v3164_v39 }
 0xa9e   :  { %v1688_v15 = vmul.f32 1.442695, %v1666_v30 }
 0xaa0   :  { %2214 = vpow2.f32 %v1688_v15 }
 0xaa1   :  { %2216 = vpow2.f32 %v1694_v20 }
 0xaa4   :  { %1724 = vadd.xlane.f32.xlu2 %v3167_v35 }
 0xaa6   :  { %v3170_v8 = vpop.eup %2214 }
 0xaa7   :  { %1720 = vadd.xlane.f32.xlu0 %v3170_v8  ;;  %v3180_v45 = vpop.eup %2216 }
 0xab3   :  { %v1540_v4 = vpop.permute.xlu1 %1539 }
 0xab4   :  { %v1562_v0 = vadd.f32 %v3053_v44, %v1540_v4 }
 0xab6   :  { %v1594_v53 = vmul.f32 0.2, %v1562_v0  ;;  %vm1578_vm13 = vcmp.ge.f32.partialorder %v1562_v0, 0.0 }
 0xab8   :  { %v1610_v28 = vsel %vm1578_vm13, %v1562_v0, %v1594_v53 }
 0xab9   :  { %v3177_v11 = vsel %vm3296_vm4, %v1610_v28, -1e+30 }
 0xaba   :  { %1656 = vmax.xlane.f32.xlu0 %v3177_v11 }
 0xac2   :  { %1726 = vadd.xlane.f32.xlu0 %v3180_v45 }
 0xace   :  { %v1711_v23 = vpop.xlane.xlu2 %1710 }
 0xacf   :  { %v1741_v48 = vmax.f32 %v1711_v23, 1e-30  ;;  %v1709_v56 = vpop.xlane.xlu0 %1708 }
 0xad0   :  { %v1740_v1 = vmax.f32 %v1709_v56, 1e-30 }
 0xad1   :  { %2218 = vrcp.f32 %v1741_v48 }
 0xad2   :  { %2220 = vrcp.f32 %v1740_v1 }
 0xad6   :  { %v1545_v12 = vpop.permute.xlu2 %1544 }
 0xad7   :  { %v2219_v50 = vpop.eup %2218  ;;  %v1563_v33 = vadd.f32 %v3053_v44, %v1545_v12  ;;  %v1649_v47 = vpop.xlane.xlu0 %1648 }
 0xad8   :  { %v2221_v29 = vpop.eup %2220  ;;  %v1670_v2 = vsub.f32 %v3124_v52, %v1649_v47  ;;  %v1773_v17 = vmul.f32 %v2219_v50, %v3115_v3 }
 0xad9   :  { %v1595_v18 = vmul.f32 0.2, %v1563_v33  ;;  %v1772_v59 = vmul.f32 %v2221_v29, %v3117_v46  ;;  %vm1579_vm7 = vcmp.ge.f32.partialorder %v1563_v33, 0.0 }
 0xada   :  { %v1696_v37 = vmul.f32 1.442695, %v1670_v2 }
 0xadb   :  { %v1788_v6 = vpack.c.bf16 %v1773_v17, %v1772_v59  ;;  %v1611_v43 = vsel %vm1579_vm7, %v1563_v33, %v1595_v18 }
 0xadc   :  { %v3189_v24 = vsel %vm3297_vm0, %v1611_v43, -1e+30  ;;  %2222 = vpow2.f32 %v1696_v37  ;;  %v3220_v37 = vld [vmem:[%s3283_s11] ss:$0 sm:$0xff]  ;;  %s2451_s11 = smov [#allocation13]  }
 0xadd   :  { %1808 = vmatmul.bf16.vlgmr.msrb.gmra.mxu3 %v1788_v6  ;;  %1658 = vmax.xlane.f32.xlu1 %v3189_v24  ;;  %s1877_s19 = sshll.u32 %s2451_s11, 4  ;;  %s1878_s19 = int_to_ptr.vmem [resolvable:$true] %s1877_s19 }
 0xade   :  { %v1713_v44 = vpop.xlane.xlu1 %1712 }
 0xadf   :  { %v1742_v19 = vmax.f32 %v1713_v44, 1e-30  ;;  %v1715_v52 = vpop.xlane.xlu0 %1714 }
 0xae0   :  { %v1743_v3 = vmax.f32 %v1715_v52, 1e-30 }
 0xae1   :  { %2224 = vrcp.f32 %v1742_v19 }
 0xae2   :  { %2226 = vrcp.f32 %v1743_v3  ;;  %v3192_v61 = vpop.eup %2222 }
 0xae5   :  { %1728 = vadd.xlane.f32.xlu1 %v3192_v61 }
 0xae7   :  { %v2225_v46 = vpop.eup %2224  ;;  %v1717_v25 = vpop.xlane.xlu0 %1716 }
 0xae8   :  { %v1774_v31 = vmul.f32 %v2225_v46, %v3128_v32  ;;  %v2227_v27 = vpop.eup %2226  ;;  %v1744_v16 = vmax.f32 %v1717_v25, 1e-30 }
 0xae9   :  { %v1775_v26 = vmul.f32 %v2227_v27, %v3131_v13 }
 0xaea   :  { %v1655_v9 = vpop.xlane.xlu1 %1654 }
 0xaeb   :  { %v1673_v40 = vsub.f32 %v3143_v42, %v1655_v9  ;;  %v1789_v51 = vpack.c.bf16 %v1775_v26, %v1774_v31 }
 0xaed   :  { %v1702_v54 = vmul.f32 1.442695, %v1673_v40  ;;  %1813 = vmatmul.bf16.gmra.mxu3 %v1789_v51 }
 0xaef   :  { %2228 = vpow2.f32 %v1702_v54  ;;  %v1719_v41 = vpop.xlane.xlu0 %1718 }
 0xaf0   :  { %2230 = vrcp.f32 %v1744_v16  ;;  %v1745_v55 = vmax.f32 %v1719_v41, 1e-30 }
 0xaf2   :  { %2232 = vrcp.f32 %v1745_v55  ;;  %v1723_v15 = vpop.xlane.xlu1 %1722 }
 0xaf3   :  { %v1747_v22 = vmax.f32 %v1723_v15, 1e-30 }
 0xaf5   :  { %v3198_v14 = vpop.eup %2228 }
 0xaf6   :  { %1734 = vadd.xlane.f32.xlu1 %v3198_v14  ;;  %v2231_v32 = vpop.eup %2230 }
 0xaf7   :  { %v1653_v58 = vpop.xlane.xlu0 %1652  ;;  %v1776_v42 = vmul.f32 %v2231_v32, %v3137_v7 }
 0xaf8   :  { %v2233_v63 = vpop.eup %2232  ;;  %v1672_v13 = vsub.f32 %v3155_v5, %v1653_v58 }
 0xaf9   :  { %v1777_v10 = vmul.f32 %v2233_v63, %v3147_v60 }
 0xafa   :  { %v1700_v57 = vmul.f32 1.442695, %v1672_v13 }
 0xafb   :  { %v1790_v34 = vpack.c.bf16 %v1777_v10, %v1776_v42 }
 0xafc   :  { %2234 = vpow2.f32 %v1700_v57 }
 0xafd   :  { %1818 = vmatmul.bf16.gmra.mxu3 %v1790_v34 }
 0xb02   :  { %v3204_v49 = vpop.eup %2234 }
 0xb03   :  { %1732 = vadd.xlane.f32.xlu0 %v3204_v49 }
 0xb0f   :  { %v1651_v38 = vpop.xlane.xlu2 %1650 }
 0xb10   :  { %v1671_v21 = vsub.f32 %v3164_v39, %v1651_v38 }
 0xb12   :  { %v1698_v30 = vmul.f32 1.442695, %v1671_v21 }
 0xb14   :  { %2236 = vpow2.f32 %v1698_v30 }
 0xb15   :  { %2238 = vrcp.f32 %v1747_v22 }
 0xb17   :  { %v1725_v23 = vpop.xlane.xlu2 %1724 }
 0xb18   :  { %v1748_v56 = vmax.f32 %v1725_v23, 1e-30 }
 0xb1a   :  { %v1721_v5 = vpop.xlane.xlu0 %1720  ;;  %v2237_v36 = vpop.eup %2236 }
 0xb1b   :  { %v1746_v7 = vmax.f32 %v1721_v5, 1e-30  ;;  %1730 = vadd.xlane.f32.xlu2 %v2237_v36  ;;  %v2239_v60 = vpop.eup %2238 }
 0xb1c   :  { %v1779_v53 = vmul.f32 %v2239_v60, %v3150_v62 }
 0xb1d   :  { %2240 = vrcp.f32 %v1746_v7 }
 0xb23   :  { %v2241_v4 = vpop.eup %2240 }
 0xb24   :  { %v1778_v0 = vmul.f32 %v2241_v4, %v3170_v8 }
 0xb26   :  { %v1791_v20 = vpack.c.bf16 %v1779_v53, %v1778_v0 }
 0xb28   :  { %1823 = vmatmul.bf16.gmra.mxu3 %v1791_v20 }
 0xb2d   :  { %v1657_v28 = vpop.xlane.xlu0 %1656 }
 0xb2e   :  { %v1674_v39 = vsub.f32 %v3177_v11, %v1657_v28 }
 0xb30   :  { %v1704_v48 = vmul.f32 1.442695, %v1674_v39 }
 0xb32   :  { %2242 = vpow2.f32 %v1704_v48 }
 0xb33   :  { %2244 = vrcp.f32 %v1748_v56 }
 0xb35   :  { %v1727_v1 = vpop.xlane.xlu0 %1726 }
 0xb36   :  { %v1749_v12 = vmax.f32 %v1727_v1, 1e-30 }
 0xb38   :  { %v3211_v50 = vpop.eup %2242  ;;  %2246 = vrcp.f32 %v1749_v12 }
 0xb39   :  { %1736 = vadd.xlane.f32.xlu2 %v3211_v50  ;;  %v2245_v8 = vpop.eup %2244 }
 0xb3a   :  { %v1780_v62 = vmul.f32 %v2245_v8, %v3167_v35 }
 0xb3e   :  { %v2247_v33 = vpop.eup %2246 }
 0xb3f   :  { %v1781_v47 = vmul.f32 %v2247_v33, %v3180_v45 }
 0xb41   :  { %v1792_v29 = vpack.c.bf16 %v1781_v47, %v1780_v62 }
 0xb43   :  { %1828 = vmatmul.bf16.gmra.mxu3 %v1792_v29 }
 0xb50   :  { %v1659_v11 = vpop.xlane.xlu1 %1658 }
 0xb51   :  { %v1675_v2 = vsub.f32 %v3189_v24, %v1659_v11 }
 0xb53   :  { %v1706_v17 = vmul.f32 1.442695, %v1675_v2 }
 0xb55   :  { %2248 = vpow2.f32 %v1706_v17 }
 0xb58   :  { %v1729_v25 = vpop.xlane.xlu1 %1728 }
 0xb59   :  { %v1750_v26 = vmax.f32 %v1729_v25, 1e-30 }
 0xb5b   :  { %v2249_v18 = vpop.eup %2248  ;;  %2250 = vrcp.f32 %v1750_v26 }
 0xb5c   :  { %1738 = vadd.xlane.f32.xlu0 %v2249_v18 }
 0xb60   :  { %v1809_v59 = vpop.f32.mrf.mxu3 }
 0xb61   :  { %v3223_v35 = vadd.f32 %v3220_v37, %v1809_v59  ;;  %v2251_v54 = vpop.eup %2250 }
 0xb62   :  { %v1782_v58 = vmul.f32 %v2251_v54, %v3192_v61 }
 0xb68   :  { %v1811_v6 = vpop.f32.mrf.mxu3 }
 0xb69   :  { %v3226_v45 = vadd.f32 %v3220_v37, %v1811_v6  ;;  %v1735_v32 = vpop.xlane.xlu1 %1734 }
 0xb6a   :  { %v1753_v10 = vmax.f32 %v1735_v32, 1e-30 }
 0xb6b   :  { %v1850_v43 = vpack.c.bf16 %v3226_v45, %v3223_v35 }
 0xb70   :  { %v1814_v24 = vpop.f32.mrf.mxu3 }
 0xb71   :  { %v3231_v19 = vadd.f32 %v3220_v37, %v1814_v24 }
 0xb76   :  { %v1733_v41 = vpop.xlane.xlu0 %1732 }
 0xb77   :  { %v1752_v13 = vmax.f32 %v1733_v41, 1e-30 }
 0xb78   :  { %v1816_v44 = vpop.f32.mrf.mxu3 }
 0xb79   :  { %v3234_v52 = vadd.f32 %v3220_v37, %v1816_v44 }
 0xb7b   :  { %v1851_v3 = vpack.c.bf16 %v3234_v52, %v3231_v19 }
 0xb80   :  { %v1819_v46 = vpop.f32.mrf.mxu3 }
 0xb81   :  { %v3239_v27 = vadd.f32 %v3220_v37, %v1819_v46  ;;  %v1849_v46 = vld [vmem:[#allocation7] sm:$0xf] }
 0xb88   :  { %v1821_v31 = vpop.f32.mrf.mxu3 }
 0xb89   :  { %v3242_v9 = vadd.f32 %v3220_v37, %v1821_v31 }
 0xb8b   :  { %v1852_v40 = vpack.c.bf16 %v3242_v9, %v3239_v27 }
 0xb8e   :  { %v1731_v51 = vpop.xlane.xlu2 %1730 }
 0xb8f   :  { %v1751_v16 = vmax.f32 %v1731_v51, 1e-30 }
 0xb91   :  { %2252 = vrcp.f32 %v1751_v16 }
 0xb92   :  { %2254 = vrcp.f32 %v1752_v13 }
 0xb93   :  { %2256 = vrcp.f32 %v1753_v10 }
 0xb97   :  { %v2253_v55 = vpop.eup %2252 }
 0xb98   :  { %v1783_v63 = vmul.f32 %v2253_v55, %v2237_v36  ;;  %v2255_v57 = vpop.eup %2254 }
 0xb99   :  { %v2257_v34 = vpop.eup %2256  ;;  %v1784_v38 = vmul.f32 %v2255_v57, %v3204_v49 }
 0xb9a   :  { %v1793_v42 = vpack.c.bf16 %v1783_v63, %v1782_v58  ;;  %v1785_v21 = vmul.f32 %v2257_v34, %v3198_v14 }
 0xb9c   :  { %1833 = vmatmul.bf16.gmra.mxu3 %v1793_v42  ;;  %v1794_v15 = vpack.c.bf16 %v1785_v21, %v1784_v38 }
 0xbab   :  { %v1824_v30 = vpop.f32.mrf.mxu3 }
 0xbac   :  { %1838 = vmatmul.bf16.gmra.mxu3 %v1794_v15  ;;  %v1825_v5 = vadd.f32 %v3220_v37, %v1824_v30  ;;  %v1737_v7 = vpop.xlane.xlu2 %1736 }
 0xbad   :  { %v1754_v60 = vmax.f32 %v1737_v7, 1e-30 }
 0xbaf   :  { %2258 = vrcp.f32 %v1754_v60 }
 0xbb3   :  { %v1826_v22 = vpop.f32.mrf.mxu3 }
 0xbb4   :  { %v1827_v61 = vadd.f32 %v3220_v37, %v1826_v22 }
 0xbb5   :  { %v2259_v53 = vpop.eup %2258 }
 0xbb6   :  { %v1853_v36 = vpack.c.bf16 %v1827_v61, %v1825_v5  ;;  %v1786_v49 = vmul.f32 %v2259_v53, %v3211_v50 }
 0xbc6   :  { %v1829_v39 = vpop.f32.mrf.mxu3 }
 0xbc7   :  { %v1830_v24 = vadd.f32 %v3220_v37, %v1829_v39 }
 0xbce   :  { %v1831_v23 = vpop.f32.mrf.mxu3 }
 0xbcf   :  { %v1739_v4 = vpop.xlane.xlu0 %1738  ;;  %v1832_v59 = vadd.f32 %v3220_v37, %v1831_v23 }
 0xbd0   :  { %v1755_v0 = vmax.f32 %v1739_v4, 1e-30 }
 0xbd1   :  { %v1854_v44 = vpack.c.bf16 %v1832_v59, %v1830_v24 }
 0xbd2   :  { %2260 = vrcp.f32 %v1755_v0 }
 0xbd8   :  { %v2261_v20 = vpop.eup %2260 }
 0xbd9   :  { %v1787_v14 = vmul.f32 %v2261_v20, %v2249_v18 }
 0xbdb   :  { %v1795_v28 = vpack.c.bf16 %v1787_v14, %v1786_v49 }
 0xbdd   :  { %1843 = vmatmul.bf16.gmra.mxu3 %v1795_v28 }
 0xc1f   :  { %v1834_v48 = vpop.f32.mrf.mxu3 }
 0xc20   :  { %v1835_v18 = vadd.f32 %v3220_v37, %v1834_v48 }
 0xc27   :  { %v1836_v56 = vpop.f32.mrf.mxu3 }
 0xc28   :  { %v1837_v2 = vadd.f32 %v3220_v37, %v1836_v56 }
 0xc2a   :  { %v1855_v6 = vpack.c.bf16 %v1837_v2, %v1835_v18 }
 0xc2f   :  { %v1839_v1 = vpop.f32.mrf.mxu3 }
 0xc30   :  { %v1840_v50 = vadd.f32 %v3220_v37, %v1839_v1 }
 0xc37   :  { %v1841_v12 = vpop.f32.mrf.mxu3 }
 0xc38   :  { %v1842_v29 = vadd.f32 %v3220_v37, %v1841_v12 }
 0xc3a   :  { %v1856_v17 = vpack.c.bf16 %v1842_v29, %v1840_v50 }
 0xc60   :  { %v1844_v8 = vpop.f32.mrf.mxu3 }
 0xc61   :  { %v1845_v62 = vadd.f32 %v3220_v37, %v1844_v8 }
 0xc68   :  { %v1846_v33 = vpop.f32.mrf.mxu3 }
 0xc69   :  { %v1847_v47 = vadd.f32 %v3220_v37, %v1846_v33 }
 0xc6b   :  { %v1857_v11 = vpack.c.bf16 %v1847_v47, %v1845_v62 }
 0xc6d   :  { %1858 = vmatpush.bf16.msra.mxu2 %v1857_v11 }
 0xc71   :  { %1859 = vmatpush.bf16.msra.mxu2 %v1856_v17 }
 0xc75   :  { %1860 = vmatpush.bf16.msra.mxu2 %v1855_v6 }
 0xc79   :  { %1861 = vmatpush.bf16.msra.mxu2 %v1854_v44 }
 0xc7d   :  { %1862 = vmatpush.bf16.msra.mxu2 %v1853_v36 }
 0xc81   :  { %1863 = vmatpush.bf16.msra.mxu2 %v1852_v40 }
 0xc85   :  { %1864 = vmatpush.bf16.msra.mxu2 %v1851_v3 }
 0xc89   :  { %1865 = vmatpush.bf16.msra.mxu2 %v1850_v43 }
 0xc8c   :  { %1866 = vmatmul.bf16.vlgmr.msra.gmra.mxu2 %v1849_v46 }
 0xd0f   :  { %v1867_v37 = vpop.f32.mrf.mxu2 }
 0xd10   :  { %1871 = vst [vmem:[#allocation13] sm:$0xff] %v1867_v37 }
 0xd11   :  { %1882 = dma.vmem_to_hbm [thread:$0]  %s1878_s19, 128, %s1880_s22, [#allocation4]  }
 0xd17   :  { %v1869_v25 = vpop.f32.mrf.mxu2 }
 0xd18   :  { %2438 = dma.done.wait [#allocation4], 128  }
 0xd19   :  { %2439 = vsyncadd [#allocation4], 4294967168 }
 0xd1a   :  { %1887 = vsyncpa [#allocation3], 1 }
 0xd1b   :  { %1888 = vsyncpa [#allocation6], 1 }
 0xd1c   :  { %1889 = vsyncpa [#allocation9], 1 }
 0xd1d   :  { %1890 = vsyncpa [#allocation12], 1 }
 0xd1e   :  { %1891 = vsyncpa [#allocation4], 1 }

</bundles_post_ra>
